<compile_context>
chip_gen: v7x
topology: tpu7x:2x2x1
jax: 0.10.0
libtpu: 0.0.40
codegen_flags: <defaults>
</compile_context>

<pallas_src>
import functools

import jax
import jax.numpy as jnp
from jax import lax
from jax.experimental import pallas as pl
from jax.experimental.pallas import tpu as pltpu


def psa_kernel(x_ref, w_ref, b_ref, o_ref, *, cr):
    # x_ref block: (1, N, C); w_ref: (C, 2*Cr + C); b_ref: (1, 2*Cr + C)
    x = x_ref[0]                                   # (N, C), f32 (residual kept f32)
    cdtype = w_ref.dtype                           # compute dtype (f32 or bf16)

    # Single fused projection: [q*scale | k | value->expand] in one MXU matmul.
    y = jnp.dot(x.astype(cdtype), w_ref[...],
                preferred_element_type=jnp.float32) + b_ref[...]     # (N, 2Cr+C) f32

    q = y[:, :cr].astype(cdtype)                   # (N, Cr), scale already folded in
    k = y[:, cr:2 * cr].astype(cdtype)             # (N, Cr)
    vw = y[:, 2 * cr:]                             # (N, C), value@expand fused, bias folded

    # attention logits: contract shared last axis (no explicit k.T relayout)
    s = lax.dot_general(q, k, dimension_numbers=(((1,), (1,)), ((), ())),
                        preferred_element_type=jnp.float32)          # (N, N)

    # max-stabilized softmax, normalization deferred past the value matmul
    s = s - jnp.max(s, axis=-1, keepdims=True)
    p = jnp.exp(s)                                                    # (N, N)
    l = jnp.sum(p, axis=-1, keepdims=True)                            # (N, 1)

    # (N, N) @ (N, C): unnormalized mixed values already in expanded space.
    out = jnp.dot(p.astype(cdtype), vw.astype(cdtype),
                  preferred_element_type=jnp.float32)                 # (N, C)

    # normalize the small (N, C) result instead of the (N, N) matrix.
    # (bias folding through the attention is exact because softmax rows sum to 1)
    out = out * pl.reciprocal(l, approx=False)

    # residual add in f32, store
    o_ref[0] = (out + x).astype(o_ref.dtype)


def prepare_psa_params(params, compute_dtype=jnp.float32):
    """One-time fold of all 1x1 convs + softmax scale into a single fused weight.

    Returns (w_all, b_all):
      w_all : (C, 2*Cr + C) = [ Wr^T Wq^T * scale | Wr^T Wk^T | Wr^T Wv^T We^T ]
      b_all : (1, 2*Cr + C) matching fused biases (kept f32 for the accumulation).
    """
    (wr, br, wq, bq, wk, bk, wv, bv, we, be) = params
    cr = wr.shape[0]
    scale = float(cr) ** -0.5
    wr_t = wr.T                                        # (C, Cr)

    wq_eff = (wr_t @ wq.T) * scale                     # (C, Cr)
    bq_eff = (br @ wq.T + bq) * scale                  # (Cr,)
    wk_eff = wr_t @ wk.T                               # (C, Cr)
    bk_eff = br @ wk.T + bk                            # (Cr,)

    # value -> expand fully fused into a (C, C) weight
    wv_eff = wr_t @ wv.T                               # (C, Cr)
    bv_eff = br @ wv.T + bv                            # (Cr,)
    wve = wv_eff @ we.T                                # (C, C)
    bve = bv_eff @ we.T + be                           # (C,)

    w_all = jnp.concatenate([wq_eff, wk_eff, wve], axis=1)            # (C, 2Cr+C)
    b_all = jnp.concatenate([bq_eff, bk_eff, bve], axis=0)[None, :]   # (1, 2Cr+C)
    return w_all.astype(compute_dtype), b_all.astype(jnp.float32)


@jax.jit
def psa_forward(x_nchw, w_all, b_all):
    """Pallas PSA forward. x_nchw: (B, C, H, W) float32 (PyTorch convention)."""
    B, C, H, W = x_nchw.shape
    N = H * W
    ctot = w_all.shape[1]
    cr = (ctot - C) // 2

    # NCHW -> (B, N, C) channels-last flattened spatial
    x = jnp.transpose(x_nchw, (0, 2, 3, 1)).reshape(B, N, C)

    kernel = functools.partial(psa_kernel, cr=cr)
    out_flat = pl.pallas_call(
        kernel,
        out_shape=jax.ShapeDtypeStruct((B, N, C), x.dtype),
        grid_spec=pltpu.PrefetchScalarGridSpec(
            num_scalar_prefetch=0,
            grid=(B,),
            in_specs=[
                pl.BlockSpec((1, N, C), lambda b: (b, 0, 0)),     # x (one image / step)
                pl.BlockSpec((C, ctot), lambda b: (0, 0)),        # fused weight
                pl.BlockSpec((1, ctot), lambda b: (0, 0)),        # fused bias
            ],
            out_specs=pl.BlockSpec((1, N, C), lambda b: (b, 0, 0)),
        ),
        # batch axis is parallel -> shards across the 2 TCs on v7x
        compiler_params=pltpu.CompilerParams(dimension_semantics=("parallel",)),
    )(x, w_all, b_all)

    # back to NCHW
    return jnp.transpose(out_flat.reshape(B, H, W, C), (0, 3, 1, 2))


def psa_reference(x_nchw, params, reduction_ratio=8):
    """Pure-JAX reference matching the PyTorch forward semantics."""
    B, C, H, W = x_nchw.shape
    Cr = C // reduction_ratio
    N = H * W
    scale = float(Cr) ** -0.5
    (wr, br, wq, bq, wk, bk, wv, bv, we, be) = params

    def conv1x1(x, w, b):  # x: (B, Cin, N), w: (Cout, Cin)
        return jnp.einsum('oc,bcn->bon', w, x) + b[None, :, None]

    x_flat = x_nchw.reshape(B, C, N)
    xr = conv1x1(x_flat, wr, br)                               # (B, Cr, N)
    q = conv1x1(xr, wq, bq)                                    # (B, Cr, N)
    k = conv1x1(xr, wk, bk)
    v = conv1x1(xr, wv, bv)
    qT = jnp.transpose(q, (0, 2, 1))                           # (B, N, Cr)
    vT = jnp.transpose(v, (0, 2, 1))                           # (B, N, Cr)
    attn = jnp.einsum('bic,bcj->bij', qT, k) * scale           # (B, N, N)
    attn = jax.nn.softmax(attn, axis=-1)
    out = jnp.einsum('bij,bjc->bic', attn, vT)                 # (B, N, Cr)
    out = jnp.transpose(out, (0, 2, 1))                        # (B, Cr, N)
    out = conv1x1(out, we, be)                                 # (B, C, N)
    return (out + x_flat).reshape(B, C, H, W)


def init_params(key, in_channels, reduction_ratio=8):
    Cr = in_channels // reduction_ratio
    keys = jax.random.split(key, 10)
    def w(k, o, i):
        return jax.random.normal(k, (o, i), jnp.float32) * 0.1
    def b(k, o):
        return jax.random.normal(k, (o,), jnp.float32) * 0.01
    return (
        w(keys[0], Cr, in_channels), b(keys[1], Cr),            # conv_reduce
        w(keys[2], Cr, Cr),          b(keys[3], Cr),            # query
        w(keys[4], Cr, Cr),          b(keys[5], Cr),            # key
        w(keys[6], Cr, Cr),          b(keys[7], Cr),            # value
        w(keys[8], in_channels, Cr), b(keys[9], in_channels),   # conv_expand
    )


if __name__ == "__main__":
    B, C, H, W = 2, 64, 16, 16   # reduction_ratio=8 -> Cr=8, N=256
    key = jax.random.PRNGKey(0)
    kx, kp = jax.random.split(key)
    x = jax.random.normal(kx, (B, C, H, W), jnp.float32)
    params = init_params(kp, C, reduction_ratio=8)

    ref = psa_reference(x, params, reduction_ratio=8)

    # f32 compute path (tight check against the pure-JAX reference)
    w_all, b_all = prepare_psa_params(params, compute_dtype=jnp.float32)
    out = jax.block_until_ready(psa_forward(x, w_all, b_all))
    assert out.shape == (B, C, H, W)
    max_err = float(jnp.max(jnp.abs(out - ref)))
    assert jnp.allclose(out, ref, atol=1e-4, rtol=1e-4), max_err

    # bf16 compute path (MXU-native on v6e / v7x; f32 accumulation + residual)
    w_bf, b_bf = prepare_psa_params(params, compute_dtype=jnp.bfloat16)
    out_bf = jax.block_until_ready(psa_forward(x, w_bf, b_bf))
    assert jnp.allclose(out_bf, ref, atol=5e-2, rtol=5e-2), \
        float(jnp.max(jnp.abs(out_bf - ref)))

    print("KERNEL_OK")
</pallas_src>

<mosaic_0001>
module attributes {stable_mosaic.version = 11 : i64} {
  func.func @psa_kernel(%arg0: i32, %arg1: memref<1x256x64xf32, #tpu.memory_space<vmem>>, %arg2: memref<64x80xf32, #tpu.memory_space<vmem>>, %arg3: memref<1x80xf32, #tpu.memory_space<vmem>>, %arg4: memref<1x256x64xf32, #tpu.memory_space<vmem>>) attributes {dimension_semantics = [#tpu.dimension_semantics<parallel>], iteration_bounds = array<i64: 2>, scalar_prefetch = 0 : i64, scratch_operands = 0 : i64, tpu.core_type = #tpu.core_type<tc>, window_params = [{transform_indices = @transform_0, window_bounds = array<i64: 1, 256, 64>}, {pipeline_mode = #tpu.pipeline_mode<synchronous>, transform_indices = @transform_1, window_bounds = array<i64: 64, 80>}, {pipeline_mode = #tpu.pipeline_mode<synchronous>, transform_indices = @transform_2, window_bounds = array<i64: 1, 80>}, {transform_indices = @transform_3, window_bounds = array<i64: 1, 256, 64>}]} {
    %c0 = arith.constant 0 : index
    %c0_0 = arith.constant 0 : index
    %c0_1 = arith.constant 0 : index
    %0 = vector.load %arg1[%c0, %c0_0, %c0_1] : memref<1x256x64xf32, #tpu.memory_space<vmem>>, vector<1x256x64xf32>
    %1 = vector.shape_cast %0 : vector<1x256x64xf32> to vector<256x64xf32>
    %c0_2 = arith.constant 0 : index
    %c0_3 = arith.constant 0 : index
    %2 = vector.load %arg2[%c0_2, %c0_3] : memref<64x80xf32, #tpu.memory_space<vmem>>, vector<64x80xf32>
    %cst = arith.constant dense<0.000000e+00> : vector<256x80xf32>
    %3 = tpu.matmul %1, %2, %cst {dimension_numbers = #tpu.dot_dimension_numbers<[1], [0], [0], [1], [0, 0, 1, 1], [], []>} : vector<256x64xf32>, vector<64x80xf32>, vector<256x80xf32> -> vector<256x80xf32>
    %c0_4 = arith.constant 0 : index
    %c0_5 = arith.constant 0 : index
    %4 = vector.load %arg3[%c0_4, %c0_5] : memref<1x80xf32, #tpu.memory_space<vmem>>, vector<1x80xf32>
    %5 = vector.broadcast %4 : vector<1x80xf32> to vector<256x80xf32>
    %6 = arith.addf %3, %5 : vector<256x80xf32>
    %7 = vector.extract_strided_slice %6 {offsets = [0, 0], sizes = [256, 8], strides = [1, 1]} : vector<256x80xf32> to vector<256x8xf32>
    %8 = vector.extract_strided_slice %6 {offsets = [0, 8], sizes = [256, 8], strides = [1, 1]} : vector<256x80xf32> to vector<256x8xf32>
    %9 = vector.extract_strided_slice %6 {offsets = [0, 16], sizes = [256, 64], strides = [1, 1]} : vector<256x80xf32> to vector<256x64xf32>
    %cst_6 = arith.constant dense<0.000000e+00> : vector<256x256xf32>
    %10 = tpu.matmul %7, %8, %cst_6 {dimension_numbers = #tpu.dot_dimension_numbers<[1], [1], [0], [0], [0, 0, 1, 0], [], []>} : vector<256x8xf32>, vector<256x8xf32>, vector<256x256xf32> -> vector<256x256xf32>
    %cst_7 = arith.constant dense<0xFF800000> : vector<256xf32>
    %11 = vector.multi_reduction <maximumf>, %10, %cst_7 [1] : vector<256x256xf32> to vector<256xf32>
    %12 = vector.shape_cast %11 : vector<256xf32> to vector<256x1xf32>
    %13 = vector.broadcast %12 : vector<256x1xf32> to vector<256x256xf32>
    %14 = arith.subf %10, %13 : vector<256x256xf32>
    %15 = math.exp %14 : vector<256x256xf32>
    %cst_8 = arith.constant dense<0.000000e+00> : vector<256xf32>
    %16 = vector.multi_reduction <add>, %15, %cst_8 [1] : vector<256x256xf32> to vector<256xf32>
    %17 = vector.shape_cast %16 : vector<256xf32> to vector<256x1xf32>
    %cst_9 = arith.constant dense<0.000000e+00> : vector<256x64xf32>
    %18 = tpu.matmul %15, %9, %cst_9 {dimension_numbers = #tpu.dot_dimension_numbers<[1], [0], [0], [1], [0, 0, 1, 1], [], []>} : vector<256x256xf32>, vector<256x64xf32>, vector<256x64xf32> -> vector<256x64xf32>
    %19 = tpu.reciprocal %17 : vector<256x1xf32> -> vector<256x1xf32>
    %20 = vector.broadcast %19 : vector<256x1xf32> to vector<256x64xf32>
    %21 = arith.mulf %18, %20 : vector<256x64xf32>
    %22 = arith.addf %21, %1 : vector<256x64xf32>
    %c0_10 = arith.constant 0 : index
    %c0_11 = arith.constant 0 : index
    %c0_12 = arith.constant 0 : index
    %23 = vector.load %arg4[%c0_10, %c0_11, %c0_12] : memref<1x256x64xf32, #tpu.memory_space<vmem>>, vector<1x256x64xf32>
    %24 = vector.shape_cast %23 : vector<1x256x64xf32> to vector<256x64xf32>
    %25 = vector.shape_cast %22 : vector<256x64xf32> to vector<1x256x64xf32>
    tpu.vector_store %arg4[%c0_10, %c0_11, %c0_12], %25 {strides = array<i32>} : memref<1x256x64xf32, #tpu.memory_space<vmem>>, vector<1x256x64xf32>,
    return
  }
  func.func @transform_0(%arg0: i32) -> (i32, i32, i32) {
    %c0_i32 = arith.constant 0 : i32
    %c0_i32_0 = arith.constant 0 : i32
    %c0_i32_1 = arith.constant 0 : i32
    return %arg0, %c0_i32, %c0_i32_0 : i32, i32, i32
  }
  func.func @transform_1(%arg0: i32) -> (i32, i32) {
    %c0_i32 = arith.constant 0 : i32
    %c0_i32_0 = arith.constant 0 : i32
    %c0_i32_1 = arith.constant 0 : i32
    return %c0_i32, %c0_i32_0 : i32, i32
  }
  func.func @transform_2(%arg0: i32) -> (i32, i32) {
    %c0_i32 = arith.constant 0 : i32
    %c0_i32_0 = arith.constant 0 : i32
    %c0_i32_1 = arith.constant 0 : i32
    return %c0_i32, %c0_i32_0 : i32, i32
  }
  func.func @transform_3(%arg0: i32) -> (i32, i32, i32) {
    %c0_i32 = arith.constant 0 : i32
    %c0_i32_0 = arith.constant 0 : i32
    %c0_i32_1 = arith.constant 0 : i32
    return %arg0, %c0_i32, %c0_i32_0 : i32, i32, i32
  }
}

</mosaic_0001>

<bundles_post_ra>
// kernel: psa_forward.1
= control target key start
LH: loop header
LB: loop body
LE: loop exit
PB: predicated region body
PF: predicated region fallthrough
CT: control target
= control target key end

     0   :  { %8 = vsyncpa [#allocation3], 0  ;;  %s4361_s0 = inlined_call_operand.hbm [shape: f32[2,256,64], index: 0, kind: input, shape index: {}]   ;;  %s4362_s1 = inlined_call_operand.hbm [shape: f32[64,80], index: 1, kind: input, shape index: {}]   ;;  %s4363_s2 = inlined_call_operand.vmem [shape: f32[1,80], index: 2, kind: input, shape index: {}]   ;;  %s4364_s3 = inlined_call_operand.hbm [shape: f32[2,256,64], index: 3, kind: output, shape index: {}]  }
   0x1   :  { %10 = vsyncpa [#allocation3 + $0x1], 0 }
   0x2   :  { %11 = vsyncpa [#allocation6], 0 }
   0x3   :  { %12 = vsyncpa [#allocation4], 0 }
   0x4   :  { %14 = vsyncpa [#allocation4 + $0x1], 0  ;;  %s3052_s12 = smov 0   ;;  %s3054_s13 = smov 0  }
   0x5   :  { %s3056_s14 = smov 0   ;;  %s3058_s15 = smov 0  }
   0x6 LB: > { %s3073_s16 = sadd.s32 4294967295, %s3020_s15   ;;  %s1985_s17 = sadd.s32 4294967294, %s3020_s15   ;;  %s3020_s15 = sphi %s3058_s15, %s4443_s15   ;;  %s3016_s14 = sphi %s3056_s14, %s4442_s14   ;;  %s3012_s13 = sphi %s3054_s13, %s4441_s13   ;;  %s3008_s12 = sphi %s3052_s12, %s4440_s12  }
   0x7   : > { %p40_p0 = scmp.ne.s32.totalorder %s3012_s13, %s3008_s12  ;;  %p4365_p1 = scmp.eq.s32.totalorder %s3073_s16, 0 }
   0x8   : > { %p112_p3 = scmp.eq.s32.totalorder %s1985_s17, 1  ;;  %p1986_p5 = scmp.ge.s32.totalorder %s3020_s15, 1 }
   0x9   : > { %p3082_p4 = por %p4365_p1, %p40_p0  ;;  %p119_p7 = scmp.lt.s32.totalorder %s3020_s15, 3 }
   0xa   : > { %p3087_p6 = por %p112_p3, %p40_p0  ;;  %s3022_s21 = smov [#allocation5]  }
   0xb   : > { %s4387_s18 = scalar_select %p3082_p4, 1, 0 }
   0xc   : > { %s4388_s19 = scalar_select %p3087_p6, 1, 0 }
   0xd   : > { %p3092_p8 = pnand %p1986_p5, %p119_p7  ;;  %s131_s22 = sshll.u32 %s3022_s21, 4  ;;  %s3096_s22 = int_to_ptr.vmem [resolvable:$true] %s131_s22 }
   0xe   : > { %s3108_s24 = sadd.s32 1, %s3020_s15   ;;  %s27_s25 = sadd.s32 1, %s3016_s14 }
   0xf   : > { %s4389_s20 = scalar_select %p3092_p8, 1, 0 }
  0x10   : > { %p2452_p9 = pneg %p3092_p8  ;;  %s24_s26 = ssub.s32 %s3020_s15, %s3108_s24 }
  0x11   : > { %s2892_s29 = scalar_lea.hbm %s4362_s1, 1024 }
  0x12   : > { %p3103_p11 = pnand %p2452_p9, %p4365_p1  ;;  %p2893_p12 = scmp.ne.s32.totalorder %s4362_s1, %s2892_s29 }
  0x13   : > { %p2899_p5 = scmp.lt.u32.totalorder %s2892_s29, %s4362_s1 }
  0x14   : > { %p2894_p13 = pneg %p3103_p11 }
  0x16   : > { %p2895_p0 = pnand %p2894_p13, %p2893_p12 }
  0x18   : > { %p2896_p3 = pneg %p2895_p0 }
  0x1a   : > { %p2901_p7 = pnand %p2899_p5, %p2896_p3 }
  0x1c   : > { %2904 = shalt.err (!%p2901_p7)
}
  0x1d   : > { %s2905_s7 = scalar_lea.vmem %s3096_s22, 1024  ;;  %p2913_p2 = scmp.lt.s32.totalorder %s3096_s22, %s3096_s22 }
  0x1e   : > { %p2906_p9 = scmp.ne.s32.totalorder %s3096_s22, %s2905_s7  ;;  %p2914_p6 = scmp.lt.s32.totalorder %s2905_s7, %s2905_s7 }
  0x20   : > { %p2908_p10 = pnand %p2906_p9, %p2894_p13  ;;  %p2915_p4 = por %p2914_p6, %p2913_p2 }
  0x22   : > { %p2909_p1 = pneg %p2908_p10 }
  0x24   : > { %p2916_p8 = pnand %p2915_p4, %p2909_p1 }
  0x26   : > { %2919 = shalt.err (!%p2916_p8)
}
  0x27   : > { %s3023_s8 = smov 128   ;;  %s3024_s9 = smov 8  }
  0x28   : > { %2455 = dma.hbm_to_vmem [thread:$0]  (!%p3103_p11), %s4362_s1, 1024, %s3096_s22, [#allocation6], %s3023_s8, %s3023_s8, %s3024_s9  }
  0x29   : > { %p25_p1 = scmp.eq.s32.totalorder %s24_s26, 0  ;;  %p34_p2 = scmp.ne.s32.totalorder %s3016_s14, %s3012_s13 }
  0x2a   : > { %p35_p4 = scmp.eq.s32.totalorder %s3020_s15, 0  ;;  %p2465_p6 = scmp.lt.s32.totalorder %s3020_s15, 2 }
  0x2b   : > { %s3142_s17 = scalar_select %p25_p1, %s3016_s14, %s27_s25  }
  0x2c   : > { %p36_p8 = por %p35_p4, %p34_p2  ;;  %p4391_p10 = scmp.eq.s32.totalorder %s3073_s16, 1 }
  0x2d   : > { %s148_s23 = sand.u32 1, %s3016_s14   ;;  %s2098_s27 = sshll.u32 %s3020_s15, 12 }
  0x2e   : > { %p3146_p12 = por %p4391_p10, %p34_p2  ;;  %s1989_s28 = sshll.u32 %s148_s23, 8 }
  0x2f   : > { %s3155_s4 = scalar_lea.hbm %s4361_s0, %s2098_s27  ;;  %s152_s22 = scalar_lea.vmem [#allocation2], %s1989_s28 }
  0x30   : > { %s159_s25 = sshll.u32 %s152_s22, 4  ;;  %p3157_p11 = pnand %p2465_p6, %p36_p8  ;;  %s3161_s25 = int_to_ptr.vmem [resolvable:$true] %s159_s25 }
  0x31   : > { %s3163_s5 = scalar_lea.sflag [#allocation3], %s148_s23  ;;  %s2920_s6 = scalar_lea.hbm %s3155_s4, 4096 }
  0x32   : > { %p2921_p13 = scmp.ne.s32.totalorder %s3155_s4, %s2920_s6  ;;  %p2922_p0 = pneg %p3157_p11 }
  0x33   : > { %s2925_s11 = scalar_lea.hbm %s4361_s0, 8192  ;;  %p2926_p7 = scmp.lt.u32.totalorder %s3155_s4, %s4361_s0 }
  0x34   : > { %p2923_p3 = pnand %p2922_p0, %p2921_p13  ;;  %p2927_p9 = scmp.lt.u32.totalorder %s2925_s11, %s2920_s6 }
  0x35   : > { %p2929_p2 = scmp.lt.u32.totalorder %s2920_s6, %s3155_s4 }
  0x36   : > { %p2924_p5 = pneg %p2923_p3  ;;  %p2928_p1 = por %p2927_p9, %p2926_p7 }
  0x38   : > { %p2930_p4 = por %p2929_p2, %p2928_p1 }
  0x3a   : > { %p2931_p6 = pnand %p2930_p4, %p2924_p5 }
  0x3c   : > { %2934 = shalt.err (!%p2931_p6)
}
  0x3d   : > { %s2935_s23 = scalar_lea.vmem %s3161_s25, 4096  ;;  %s3025_s29 = smov [#allocation2]  }
  0x3e   : > { %p2936_p8 = scmp.ne.s32.totalorder %s3161_s25, %s2935_s23  ;;  %s2940_s30 = sshll.u32 %s3025_s29, 4  ;;  %s2941_s30 = int_to_ptr.vmem [resolvable:$false] %s2940_s30 }
  0x3f   : > { %s2942_s22 = scalar_lea.vmem %s2941_s30, 8192  ;;  %p2943_p3 = scmp.lt.s32.totalorder %s3161_s25, %s2941_s30 }
  0x40   : > { %p2938_p10 = pnand %p2936_p8, %p2922_p0  ;;  %p2944_p7 = scmp.lt.s32.totalorder %s2942_s22, %s2935_s23 }
  0x42   : > { %p2939_p13 = pneg %p2938_p10  ;;  %p2945_p9 = por %p2944_p7, %p2943_p3 }
  0x44   : > { %p2946_p1 = pnand %p2945_p9, %p2939_p13 }
  0x46   : > { %2949 = shalt.err (!%p2946_p1)
}
  0x47   : > { %2459 = dma.hbm_to_vmem [thread:$0]  (!%p3157_p11), %s3155_s4, 4096, %s3161_s25, %s3163_s5, %s3023_s8, %s3023_s8, %s3024_s9  }
  0x48   : > { %p4394_p0 = scmp.ne.s32.totalorder %s4389_s20, 0 }
  0x4a   : > { %171 = sbr.rel (%p4394_p0) target bundleno = 1354 (0x54a), region = 32 }
  0x51   : > { %s3197_s6 = sand.u32 1, %s3012_s13   ;;  %p4395_p5 = scmp.ne.s32.totalorder %s4387_s18, 0 }
  0x52   : > { %s1993_s7 = sshll.u32 %s3197_s6, 8  ;;  %s174_s10 = scalar_lea.sflag [#allocation3], %s3197_s6 }
  0x53   : > { %s3203_s26 = scalar_lea.vmem [#allocation2], %s1993_s7 }
  0x54   : > { %2995 = dma.done.wait (%p4395_p5), %s174_s10, 4096  }
  0x55   : > { %2997 = vsyncadd (%p4395_p5), %s174_s10, 4294963200  ;;  %p4396_p11 = scmp.eq.s32.totalorder %s3073_s16, 0 }
  0x57   : > { %2999 = dma.done.wait (%p4396_p11), [#allocation6], 1024   ;;  %p4397_p2 = pmov %p4396_p11 }
  0x58   : > { %v236_v0 = vld [vmem:[#allocation5] sm:$0xff]  ;;  %v237_v1 = vld [vmem:[#allocation5 + $0x8] sm:$0xff]  ;;  %v238_v2 = vld [vmem:[#allocation5 + $0x10] sm:$0xff]  ;;  %vm251_vm0 = vcmask 523264   ;;  %vm669_vm1 = vcmask 64512   ;;  %s3026_s8 = smov 120  }
  0x59   : > { %3001 = vsyncadd (%p4397_p2), [#allocation6], 4294966272  ;;  %v2300_v3 = vpack.c.bf16 %v237_v1, %v236_v0  ;;  %v239_v4 = vld [vmem:[#allocation5 + $0x18] sm:$0xff]  ;;  %v240_v6 = vld [vmem:[#allocation5 + $0x20] sm:$0xff]  ;;  %s3028_s9 = smov 112   ;;  %s4171_s4 = scalar_lea.vmem [#allocation7], %s1993_s7 }
  0x5a   : > { %v2304_v5 = vpack.c.bf16 %v239_v4, %v238_v2  ;;  %v241_v7 = vld [vmem:[#allocation5 + $0x28] sm:$0xff]  ;;  %v204_v8 = vld [vmem:[%s3203_s26] sm:$0xff]  ;;  %v242_v10 = vld [vmem:[#allocation5 + $0x30] sm:$0xff]  ;;  %s2099_s25 = sshll.u32 %s3073_s16, 12  ;;  %s1902_s5 = sshll.u32 %s4171_s4, 4  ;;  %s4314_s5 = int_to_ptr.vmem [resolvable:$true] %s1902_s5 }
  0x5b   : > { %2301 = vmatprep.subr.bf16.mxu0 %v2300_v3  ;;  %2252 = vmatprep.mubr.msk.f32.mxu0 %vm251_vm0, %v204_v8  ;;  %v2308_v9 = vpack.c.bf16 %v241_v7, %v240_v6  ;;  %v243_v11 = vld [vmem:[#allocation5 + $0x38] sm:$0xff]  ;;  %v205_v13 = vld [vmem:[%s3203_s26 + $0x8] sm:$0xff]  ;;  %v206_v14 = vld [vmem:[%s3203_s26 + $0x10] sm:$0xff]  ;;  %s4312_s28 = scalar_lea.hbm %s4364_s3, %s2099_s25  ;;  %s1889_s16 = scalar_lea.sflag [#allocation4], %s3197_s6 }
  0x5c   : > { %2303 = vmatpush3.bf16.msra.mxu0 %v2300_v3  ;;  %v2312_v12 = vpack.c.bf16 %v243_v11, %v242_v10  ;;  %v207_v15 = vld [vmem:[%s3203_s26 + $0x18] sm:$0xff]  ;;  %v208_v16 = vld [vmem:[%s3203_s26 + $0x20] sm:$0xff]  ;;  %v209_v17 = vld [vmem:[%s3203_s26 + $0x28] sm:$0xff]  ;;  %s2950_s23 = scalar_lea.vmem %s4314_s5, 4096  ;;  %s3029_s29 = smov [#allocation7]  }
  0x5d   : > { %2305 = vmatprep.subr.bf16.mxu0 %v2304_v5  ;;  %v210_v18 = vld [vmem:[%s3203_s26 + $0x30] sm:$0xff]  ;;  %v211_v19 = vld [vmem:[%s3203_s26 + $0x38] sm:$0xff]  ;;  %v212_v20 = vld [vmem:[%s3203_s26 + $0x40] sm:$0xff]  ;;  %p2951_p4 = scmp.ne.s32.totalorder %s4314_s5, %s2950_s23  ;;  %s2954_s30 = sshll.u32 %s3029_s29, 4  ;;  %s2955_s30 = int_to_ptr.vmem [resolvable:$false] %s2954_s30 }
  0x5e   : > { %v213_v21 = vld [vmem:[%s3203_s26 + $0x48] sm:$0xff]  ;;  %v214_v22 = vld [vmem:[%s3203_s26 + $0x50] sm:$0xff]  ;;  %v215_v23 = vld [vmem:[%s3203_s26 + $0x58] sm:$0xff]  ;;  %s2956_s22 = scalar_lea.vmem %s2955_s30, 8192  ;;  %p2957_p10 = scmp.lt.s32.totalorder %s4314_s5, %s2955_s30 }
  0x5f   : > { %v216_v24 = vld [vmem:[%s3203_s26 + $0x60] sm:$0xff]  ;;  %v217_v25 = vld [vmem:[%s3203_s26 + $0x68] sm:$0xff]  ;;  %v218_v26 = vld [vmem:[%s3203_s26 + $0x70] sm:$0xff]  ;;  %p2952_p6 = pnand %p2951_p4, %p3146_p12  ;;  %p2958_p13 = scmp.lt.s32.totalorder %s2956_s22, %s2950_s23 }
  0x60   : > { %2307 = vmatpush3.bf16.msra.mxu0 %v2304_v5  ;;  %v219_v27 = vld [vmem:[%s3203_s26 + $0x78] sm:$0xff]  ;;  %v220_v28 = vld [vmem:[%s3203_s26 + $0x80] sm:$0xff]  ;;  %v221_v29 = vld [vmem:[%s3203_s26 + $0x88] sm:$0xff] }
  0x61   : > { %2309 = vmatprep.subr.bf16.mxu0 %v2308_v9  ;;  %v222_v30 = vld [vmem:[%s3203_s26 + $0x90] sm:$0xff]  ;;  %v223_v31 = vld [vmem:[%s3203_s26 + $0x98] sm:$0xff]  ;;  %v224_v32 = vld [vmem:[%s3203_s26 + $0xa0] sm:$0xff]  ;;  %p2953_p8 = pneg %p2952_p6  ;;  %p2959_p3 = por %p2958_p13, %p2957_p10 }
  0x62   : > { %v225_v33 = vld [vmem:[%s3203_s26 + $0xa8] sm:$0xff]  ;;  %v226_v34 = vld [vmem:[%s3203_s26 + $0xb0] sm:$0xff]  ;;  %v227_v35 = vld [vmem:[%s3203_s26 + $0xb8] sm:$0xff] }
  0x63   : > { %v228_v36 = vld [vmem:[%s3203_s26 + $0xc0] sm:$0xff]  ;;  %v229_v37 = vld [vmem:[%s3203_s26 + $0xc8] sm:$0xff]  ;;  %v230_v38 = vld [vmem:[%s3203_s26 + $0xd0] sm:$0xff]  ;;  %p2960_p7 = pnand %p2959_p3, %p2953_p8 }
  0x64   : > { %2311 = vmatpush3.bf16.msra.mxu0 %v2308_v9  ;;  %v231_v39 = vld [vmem:[%s3203_s26 + $0xd8] sm:$0xff]  ;;  %v232_v40 = vld [vmem:[%s3203_s26 + $0xe0] sm:$0xff]  ;;  %v233_v41 = vld [vmem:[%s3203_s26 + $0xe8] sm:$0xff] }
  0x65   : > { %2313 = vmatprep.subr.bf16.mxu0 %v2312_v12  ;;  %v234_v42 = vld [vmem:[%s3203_s26 + $0xf0] sm:$0xff]  ;;  %v235_v43 = vld [vmem:[%s3203_s26 + $0xf8] sm:$0xff]  ;;  %v3280_v44 = vld [vmem:[%s4363_s2] ss:$0 sm:$0xff] }
  0x66   : > { %vm3475_vm2 = vmpackc.low %vm669_vm1, %vm669_vm1 }
  0x68   : > { %2315 = vmatpush3.bf16.msra.mxu0 %v2312_v12 }
  0x6b   : > { %2253 = vmatmul.mubr.msk.f32.vlgmr.msra.gmra.mrb[0].mxu0 %vm251_vm0, %v205_v13 }
  0x6c   : > { %2255 = vmatprep.mubr.msk.f32.mxu0 %vm251_vm0, %v206_v14 }
  0x6f   : > { %2256 = vmatmul.mubr.msk.f32.gmra.mrb[2].mxu0 %vm251_vm0, %v207_v15 }
  0x70   : > { %2258 = vmatprep.mubr.msk.f32.mxu0 %vm251_vm0, %v208_v16 }
  0x73   : > { %2259 = vmatmul.mubr.msk.f32.gmra.mrb[4].mxu0 %vm251_vm0, %v209_v17 }
  0x74   : > { %2261 = vmatprep.mubr.msk.f32.mxu0 %vm251_vm0, %v210_v18 }
  0x77   : > { %2262 = vmatmul.mubr.msk.f32.gmra.mrb[6].mxu0 %vm251_vm0, %v211_v19 }
  0x78   : > { %2264 = vmatprep.mubr.msk.f32.mxu0 %vm251_vm0, %v212_v20 }
  0x7b   : > { %2265 = vmatmul.mubr.msk.f32.gmra.mrb[8].mxu0 %vm251_vm0, %v213_v21 }
  0x7c   : > { %2267 = vmatprep.mubr.msk.f32.mxu0 %vm251_vm0, %v214_v22 }
  0x7f   : > { %2268 = vmatmul.mubr.msk.f32.gmra.mrb[10].mxu0 %vm251_vm0, %v215_v23 }
  0x80   : > { %2270 = vmatprep.mubr.msk.f32.mxu0 %vm251_vm0, %v216_v24 }
  0x83   : > { %2271 = vmatmul.mubr.msk.f32.gmra.mrb[12].mxu0 %vm251_vm0, %v217_v25 }
  0x84   : > { %2273 = vmatprep.mubr.msk.f32.mxu0 %vm251_vm0, %v218_v26 }
  0x87   : > { %2274 = vmatmul.mubr.msk.f32.gmra.mrb[14].mxu0 %vm251_vm0, %v219_v27 }
  0x88   : > { %2276 = vmatprep.mubr.msk.f32.mxu0 %vm251_vm0, %v220_v28 }
  0x8b   : > { %2277 = vmatmul.mubr.msk.f32.gmra.mrb[16].mxu0 %vm251_vm0, %v221_v29 }
  0x8c   : > { %2279 = vmatprep.mubr.msk.f32.mxu0 %vm251_vm0, %v222_v30 }
  0x8f   : > { %2280 = vmatmul.mubr.msk.f32.gmra.mrb[18].mxu0 %vm251_vm0, %v223_v31 }
  0x90   : > { %2282 = vmatprep.mubr.msk.f32.mxu0 %vm251_vm0, %v224_v32 }
  0x93   : > { %2283 = vmatmul.mubr.msk.f32.gmra.mrb[20].mxu0 %vm251_vm0, %v225_v33 }
  0x94   : > { %2285 = vmatprep.mubr.msk.f32.mxu0 %vm251_vm0, %v226_v34 }
  0x97   : > { %2286 = vmatmul.mubr.msk.f32.gmra.mrb[22].mxu0 %vm251_vm0, %v227_v35 }
  0x98   : > { %2288 = vmatprep.mubr.msk.f32.mxu0 %vm251_vm0, %v228_v36 }
  0x9b   : > { %2289 = vmatmul.mubr.msk.f32.gmra.mrb[24].mxu0 %vm251_vm0, %v229_v37 }
  0x9c   : > { %2291 = vmatprep.mubr.msk.f32.mxu0 %vm251_vm0, %v230_v38 }
  0x9f   : > { %2292 = vmatmul.mubr.msk.f32.gmra.mrb[26].mxu0 %vm251_vm0, %v231_v39 }
  0xa0   : > { %2294 = vmatprep.mubr.msk.f32.mxu0 %vm251_vm0, %v232_v40 }
  0xa3   : > { %2295 = vmatmul.mubr.msk.f32.gmra.mrb[28].mxu0 %vm251_vm0, %v233_v41 }
  0xa4   : > { %2297 = vmatprep.mubr.msk.f32.mxu0 %vm251_vm0, %v234_v42 }
  0xa7   : > { %2298 = vmatmul.mubr.msk.f32.gmra.mrb[30].mxu0 %vm251_vm0, %v235_v43 }
 0x13e   : > { %v2254_v45 = vpop.f32.mrb[0].mxu0 }
 0x13f   : > { %v414_v46 = vpop.f32.mrb[1].mxu0  ;;  %v3304_v4 = vadd.f32 %v2254_v45, %v3280_v44 }
 0x140   : > { %v3283_v47 = vadd.f32 %v3280_v44, %v414_v46 }
 0x142   : > { %v2257_v48 = vpop.f32.mrb[2].mxu0  ;;  %2172 = vmatprep.mubr.msk.f32.mxu1 %vm669_vm1, %v3283_v47  ;;  %v3330_v14 = vpack.i.bf16 %v3304_v4, %v3283_v47 }
 0x143   : > { %v424_v49 = vpop.f32.mrb[3].mxu0  ;;  %v3319_v10 = vadd.f32 %v2257_v48, %v3280_v44 }
 0x144   : > { %v3322_v11 = vadd.f32 %v3280_v44, %v424_v49 }
 0x146   : > { %v2260_v50 = vpop.f32.mrb[4].mxu0  ;;  %v2523_v21 = vpack.i.bf16 %v3319_v10, %v3322_v11 }
 0x147   : > { %v434_v51 = vpop.f32.mrb[5].mxu0  ;;  %v3343_v18 = vadd.f32 %v2260_v50, %v3280_v44 }
 0x148   : > { %v3346_v19 = vadd.f32 %v3280_v44, %v434_v51 }
 0x14a   : > { %v2263_v52 = vpop.f32.mrb[6].mxu0  ;;  %v2533_v29 = vpack.i.bf16 %v3343_v18, %v3346_v19 }
 0x14b   : > { %v444_v53 = vpop.f32.mrb[7].mxu0  ;;  %v3364_v26 = vadd.f32 %v2263_v52, %v3280_v44 }
 0x14c   : > { %v3367_v27 = vadd.f32 %v3280_v44, %v444_v53 }
 0x14e   : > { %v2266_v54 = vpop.f32.mrb[8].mxu0  ;;  %v2543_v37 = vpack.i.bf16 %v3364_v26, %v3367_v27 }
 0x14f   : > { %v454_v55 = vpop.f32.mrb[9].mxu0  ;;  %v3382_v34 = vadd.f32 %v2266_v54, %v3280_v44 }
 0x150   : > { %v3385_v35 = vadd.f32 %v3280_v44, %v454_v55 }
 0x152   : > { %v2269_v56 = vpop.f32.mrb[10].mxu0  ;;  %v2553_v46 = vpack.i.bf16 %v3382_v34, %v3385_v35 }
 0x153   : > { %v464_v57 = vpop.f32.mrb[11].mxu0  ;;  %v3400_v42 = vadd.f32 %v2269_v56, %v3280_v44 }
 0x154   : > { %v3403_v43 = vadd.f32 %v3280_v44, %v464_v57  ;;  %v4368_v57 = vmov 0.0|0.0  }
 0x155   : > { %2364 = vmatprep.subr.bf16.mxu0 %v4368_v57 }
 0x156   : > { %v3287_v58 = vpop.f32.mrb[12].mxu0  ;;  %v2563_v55 = vpack.i.bf16 %v3400_v42, %v3403_v43 }
 0x157   : > { %v3289_v59 = vpop.f32.mrb[13].mxu0  ;;  %v3422_v52 = vadd.f32 %v3287_v58, %v3280_v44 }
 0x158   : > { %v3426_v53 = vadd.f32 %v3280_v44, %v3289_v59 }
 0x15a   : > { %v2275_v60 = vpop.f32.mrb[14].mxu0  ;;  %v2573_v59 = vpack.i.bf16 %v3422_v52, %v3426_v53 }
 0x15b   : > { %v3292_v61 = vadd.f32 %v2275_v60, %v3280_v44  ;;  %v484_v62 = vpop.f32.mrb[15].mxu0 }
 0x15c   : > { %v3295_v63 = vadd.f32 %v3280_v44, %v484_v62 }
 0x15e   : > { %v2278_v0 = vpop.f32.mrb[16].mxu0 }
 0x15f   : > { %v3298_v1 = vadd.f32 %v2278_v0, %v3280_v44  ;;  %v494_v2 = vpop.f32.mrb[17].mxu0 }
 0x160   : > { %v3301_v3 = vadd.f32 %v3280_v44, %v494_v2 }
 0x162   : > { %v2281_v5 = vpop.f32.mrb[18].mxu0  ;;  %v3308_v6 = vpack.i.bf16 %v3298_v1, %v3301_v3 }
 0x163   : > { %v3311_v7 = vadd.f32 %v2281_v5, %v3280_v44  ;;  %v504_v8 = vpop.f32.mrb[19].mxu0 }
 0x164   : > { %v3314_v9 = vadd.f32 %v3280_v44, %v504_v8  ;;  %2509 = vrot.lane.b32.xlu0 %v3308_v6, %s3026_s8 }
 0x166   : > { %v2284_v12 = vpop.f32.mrb[20].mxu0  ;;  %v3326_v13 = vpack.i.bf16 %v3311_v7, %v3314_v9 }
 0x167   : > { %v3333_v15 = vadd.f32 %v2284_v12, %v3280_v44  ;;  %v514_v16 = vpop.f32.mrb[21].mxu0 }
 0x168   : > { %v3336_v17 = vadd.f32 %v3280_v44, %v514_v16  ;;  %2519 = vrot.lane.b32.xlu1 %v3326_v13, %s3026_s8  ;;  %2514 = vrot.lane.b32.xlu0 %v3330_v14, %s3026_s8 }
 0x16a   : > { %v2287_v20 = vpop.f32.mrb[22].mxu0  ;;  %v3352_v22 = vpack.i.bf16 %v3333_v15, %v3336_v17 }
 0x16b   : > { %v3355_v23 = vadd.f32 %v2287_v20, %v3280_v44  ;;  %v524_v24 = vpop.f32.mrb[23].mxu0 }
 0x16c   : > { %v3358_v25 = vadd.f32 %v3280_v44, %v524_v24  ;;  %2524 = vrot.lane.b32.xlu1 %v2523_v21, %s3026_s8  ;;  %2529 = vrot.lane.b32.xlu0 %v3352_v22, %s3026_s8 }
 0x16e   : > { %v2290_v28 = vpop.f32.mrb[24].mxu0  ;;  %v2538_v30 = vpack.i.bf16 %v3355_v23, %v3358_v25 }
 0x16f   : > { %v3374_v31 = vadd.f32 %v2290_v28, %v3280_v44  ;;  %v534_v32 = vpop.f32.mrb[25].mxu0 }
 0x170   : > { %v3377_v33 = vadd.f32 %v3280_v44, %v534_v32  ;;  %2534 = vrot.lane.b32.xlu1 %v2533_v29, %s3026_s8  ;;  %2539 = vrot.lane.b32.xlu0 %v2538_v30, %s3026_s8 }
 0x172   : > { %v2293_v36 = vpop.f32.mrb[26].mxu0  ;;  %v2548_v38 = vpack.i.bf16 %v3374_v31, %v3377_v33 }
 0x173   : > { %v3392_v39 = vadd.f32 %v2293_v36, %v3280_v44  ;;  %v544_v40 = vpop.f32.mrb[27].mxu0 }
 0x174   : > { %v3395_v41 = vadd.f32 %v3280_v44, %v544_v40  ;;  %2544 = vrot.lane.b32.xlu1 %v2543_v37, %s3026_s8  ;;  %2549 = vrot.lane.b32.xlu0 %v2548_v38, %s3026_s8 }
 0x176   : > { %v2296_v45 = vpop.f32.mrb[28].mxu0  ;;  %v3409_v48 = vpack.i.bf16 %v3392_v39, %v3395_v41 }
 0x177   : > { %v3412_v49 = vadd.f32 %v2296_v45, %v3280_v44  ;;  %v554_v50 = vpop.f32.mrb[29].mxu0 }
 0x178   : > { %v3415_v51 = vadd.f32 %v3280_v44, %v554_v50  ;;  %2554 = vrot.lane.b32.xlu1 %v2553_v46, %s3026_s8  ;;  %2559 = vrot.lane.b32.xlu0 %v3409_v48, %s3026_s8 }
 0x17a   : > { %v2299_v54 = vpop.f32.mrb[30].mxu0  ;;  %v3432_v56 = vpack.i.bf16 %v3412_v49, %v3415_v51 }
 0x17b   : > { %v3436_v60 = vadd.f32 %v2299_v54, %v3280_v44  ;;  %v564_v58 = vpop.f32.mrb[31].mxu0 }
 0x17c   : > { %v3439_v62 = vadd.f32 %v3280_v44, %v564_v58  ;;  %2564 = vrot.lane.b32.xlu1 %v2563_v55, %s3026_s8  ;;  %2569 = vrot.lane.b32.xlu0 %v3432_v56, %s3026_s8  ;;  %v2583_v44 = vpack.i.bf16 %v3292_v61, %v3295_v63 }
 0x17e   : > { %v3448_v0 = vpack.i.bf16 %v3436_v60, %v3439_v62 }
 0x180   : > { %2574 = vrot.lane.b32.xlu1 %v2573_v59, %s3026_s8  ;;  %2579 = vrot.lane.b32.xlu0 %v3448_v0, %s3026_s8 }
 0x184   : > { %2584 = vrot.lane.b32.xlu1 %v2583_v44, %s3026_s8  ;;  %2589 = vrot.lane.b32.xlu0 %v3330_v14, %s3028_s9 }
 0x188   : > { %2594 = vrot.lane.b32.xlu1 %v2523_v21, %s3028_s9  ;;  %2599 = vrot.lane.b32.xlu0 %v2533_v29, %s3028_s9 }
 0x18c   : > { %2604 = vrot.lane.b32.xlu1 %v2543_v37, %s3028_s9  ;;  %2609 = vrot.lane.b32.xlu0 %v2553_v46, %s3028_s9 }
 0x190   : > { %2614 = vrot.lane.b32.xlu1 %v2563_v55, %s3028_s9  ;;  %2619 = vrot.lane.b32.xlu0 %v2573_v59, %s3028_s9 }
 0x194   : > { %2624 = vrot.lane.b32.xlu1 %v2583_v44, %s3028_s9  ;;  %2629 = vrot.lane.b32.xlu0 %v3308_v6, %s3028_s9 }
 0x198   : > { %2639 = vrot.lane.b32.xlu1 %v3352_v22, %s3028_s9  ;;  %2634 = vrot.lane.b32.xlu0 %v3326_v13, %s3028_s9 }
 0x19c   : > { %2644 = vrot.lane.b32.xlu0 %v2538_v30, %s3028_s9 }
 0x1a0   : > { %2649 = vrot.lane.b32.xlu0 %v2548_v38, %s3028_s9 }
 0x1d6   : > { %v2510_v2 = vpop.permute.xlu0 %2509 }
 0x1d7   : > { %v2512_v5 = vunpack.i.h.bf16 %v2510_v2  ;;  %v2511_v8 = vunpack.i.l.bf16 %v2510_v2 }
 0x1d9   : > { %v2316_v6 = vpack.c.bf16 %v2512_v5, %v2511_v8 }
 0x1da   : > { %v2520_v14 = vpop.permute.xlu1 %2519  ;;  %v2515_v16 = vpop.permute.xlu0 %2514 }
 0x1db   : > { %v2522_v20 = vunpack.i.h.bf16 %v2520_v14  ;;  %v2521_v21 = vunpack.i.l.bf16 %v2520_v14  ;;  %v2517_v22 = vunpack.i.h.bf16 %v2515_v16  ;;  %v2516_v13 = vunpack.i.l.bf16 %v2515_v16  ;;  %2318 = vmatprep.subr.msk.bf16.mxu1 %vm3475_vm2, %v2316_v6 }
 0x1dd   : > { %v2322_v24 = vpack.c.bf16 %v2522_v20, %v2521_v21  ;;  %v2319_v28 = vpack.c.bf16 %v2517_v22, %v2516_v13 }
 0x1de   : > { %v2525_v29 = vpop.permute.xlu1 %2524  ;;  %v2530_v30 = vpop.permute.xlu0 %2529 }
 0x1df   : > { %2321 = vmatpush3.bf16.xpose.msk.msra.mxu1 %vm3475_vm2, %v2319_v28  ;;  %v2532_v32 = vunpack.i.h.bf16 %v2530_v30  ;;  %v2531_v36 = vunpack.i.l.bf16 %v2530_v30  ;;  %v2527_v37 = vunpack.i.h.bf16 %v2525_v29  ;;  %v2526_v38 = vunpack.i.l.bf16 %v2525_v29 }
 0x1e0   : > { %2324 = vmatprep.subr.msk.bf16.mxu1 %vm3475_vm2, %v2322_v24 }
 0x1e1   : > { %v2328_v46 = vpack.c.bf16 %v2532_v32, %v2531_v36  ;;  %v2325_v50 = vpack.c.bf16 %v2527_v37, %v2526_v38 }
 0x1e2   : > { %v2535_v40 = vpop.permute.xlu1 %2534  ;;  %v2540_v45 = vpop.permute.xlu0 %2539 }
 0x1e3   : > { %v2542_v58 = vunpack.i.h.bf16 %v2540_v45  ;;  %v2541_v59 = vunpack.i.l.bf16 %v2540_v45  ;;  %v2537_v44 = vunpack.i.h.bf16 %v2535_v40  ;;  %v2536_v2 = vunpack.i.l.bf16 %v2535_v40 }
 0x1e5   : > { %v2334_v6 = vpack.c.bf16 %v2542_v58, %v2541_v59  ;;  %v2331_v14 = vpack.c.bf16 %v2537_v44, %v2536_v2 }
 0x1e6   : > { %v2545_v54 = vpop.permute.xlu1 %2544  ;;  %v2550_v55 = vpop.permute.xlu0 %2549 }
 0x1e7   : > { %2327 = vmatpush3.bf16.xpose.msk.msra.mxu1 %vm3475_vm2, %v2325_v50  ;;  %v2552_v21 = vunpack.i.h.bf16 %v2550_v55  ;;  %v2551_v22 = vunpack.i.l.bf16 %v2550_v55  ;;  %v2547_v13 = vunpack.i.h.bf16 %v2545_v54  ;;  %v2546_v24 = vunpack.i.l.bf16 %v2545_v54 }
 0x1e8   : > { %2330 = vmatprep.subr.msk.bf16.mxu1 %vm3475_vm2, %v2328_v46 }
 0x1e9   : > { %v2340_v30 = vpack.c.bf16 %v2552_v21, %v2551_v22  ;;  %v2337_v32 = vpack.c.bf16 %v2547_v13, %v2546_v24 }
 0x1ea   : > { %v2555_v5 = vpop.permute.xlu1 %2554  ;;  %v2560_v8 = vpop.permute.xlu0 %2559 }
 0x1eb   : > { %v2562_v45 = vunpack.i.h.bf16 %v2560_v8  ;;  %v2561_v46 = vunpack.i.l.bf16 %v2560_v8  ;;  %v2557_v50 = vunpack.i.h.bf16 %v2555_v5  ;;  %v2556_v54 = vunpack.i.l.bf16 %v2555_v5 }
 0x1ee   : > { %v2565_v16 = vpop.permute.xlu1 %2564  ;;  %v2570_v20 = vpop.permute.xlu0 %2569 }
 0x1ef   : > { %2333 = vmatpush3.bf16.xpose.msk.msra.mxu1 %vm3475_vm2, %v2331_v14  ;;  %v2343_v14 = vpack.c.bf16 %v2557_v50, %v2556_v54  ;;  %v2567_v5 = vunpack.i.h.bf16 %v2565_v16  ;;  %v2572_v24 = vunpack.i.h.bf16 %v2570_v20 }
 0x1f0   : > { %2336 = vmatprep.subr.msk.bf16.mxu1 %vm3475_vm2, %v2334_v6  ;;  %v2346_v6 = vpack.c.bf16 %v2562_v45, %v2561_v46 }
 0x1f2   : > { %v3493_v28 = vpop.permute.xlu1 %2574  ;;  %v2580_v29 = vpop.permute.xlu0 %2579 }
 0x1f6   : > { %v3495_v36 = vpop.permute.xlu1 %2584  ;;  %v2590_v37 = vpop.permute.xlu0 %2589 }
 0x1f7   : > { %v2592_v38 = vunpack.i.h.bf16 %v2590_v37  ;;  %v2591_v40 = vunpack.i.l.bf16 %v2590_v37  ;;  %2339 = vmatpush3.bf16.xpose.msk.msra.mxu1 %vm3475_vm2, %v2337_v32  ;;  %v2566_v32 = vunpack.i.l.bf16 %v2565_v16  ;;  %v2577_v16 = vunpack.i.h.bf16 %v3493_v28 }
 0x1f8   : > { %2342 = vmatprep.subr.msk.bf16.mxu1 %vm3475_vm2, %v2340_v30  ;;  %v2571_v30 = vunpack.i.l.bf16 %v2570_v20 }
 0x1f9   : > { %v3501_v55 = vpack.c.bf16 %v2592_v38, %v2591_v40  ;;  %v2349_v50 = vpack.c.bf16 %v2567_v5, %v2566_v32 }
 0x1fa   : > { %v2595_v58 = vpop.permute.xlu1 %2594  ;;  %v2600_v59 = vpop.permute.xlu0 %2599  ;;  %v2352_v46 = vpack.c.bf16 %v2572_v24, %v2571_v30 }
 0x1fb   : > { %v2597_v44 = vunpack.i.h.bf16 %v2595_v58  ;;  %v2596_v2 = vunpack.i.l.bf16 %v2595_v58  ;;  %2366 = vmatpush1.bf16.msra.mxu0 %v3501_v55  ;;  %v2602_v8 = vunpack.i.h.bf16 %v2600_v59  ;;  %v2601_v22 = vunpack.i.l.bf16 %v2600_v59 }
 0x1fc   : > { %2367 = vmatprep.subr.bf16.mxu0 %v4368_v57 }
 0x1fd   : > { %v3505_v21 = vpack.c.bf16 %v2597_v44, %v2596_v2  ;;  %v3513_v37 = vpack.c.bf16 %v2602_v8, %v2601_v22  ;;  %v2582_v44 = vunpack.i.h.bf16 %v2580_v29  ;;  %v2581_v2 = vunpack.i.l.bf16 %v2580_v29 }
 0x1fe   : > { %v2605_v13 = vpop.permute.xlu1 %2604  ;;  %v2610_v45 = vpop.permute.xlu0 %2609 }
 0x1ff   : > { %2345 = vmatpush3.bf16.xpose.msk.msra.mxu1 %vm3475_vm2, %v2343_v14  ;;  %2369 = vmatpush1.bf16.msra.mxu0 %v3505_v21  ;;  %v2607_v38 = vunpack.i.h.bf16 %v2605_v13  ;;  %v2606_v40 = vunpack.i.l.bf16 %v2605_v13  ;;  %v2612_v20 = vunpack.i.h.bf16 %v2610_v45  ;;  %v2611_v58 = vunpack.i.l.bf16 %v2610_v45 }
 0x200   : > { %2370 = vmatprep.subr.bf16.mxu0 %v4368_v57  ;;  %2348 = vmatprep.subr.msk.bf16.mxu1 %vm3475_vm2, %v2346_v6  ;;  %v2576_v6 = vunpack.i.l.bf16 %v3493_v28  ;;  %v2358_v5 = vpack.c.bf16 %v2582_v44, %v2581_v2  ;;  %v2587_v28 = vunpack.i.h.bf16 %v3495_v36 }
 0x201   : > { %v3517_v54 = vpack.c.bf16 %v2607_v38, %v2606_v40  ;;  %v3527_v14 = vpack.c.bf16 %v2612_v20, %v2611_v58  ;;  %v2586_v40 = vunpack.i.l.bf16 %v3495_v36 }
 0x202   : > { %v2615_v59 = vpop.permute.xlu1 %2614  ;;  %v2620_v13 = vpop.permute.xlu0 %2619  ;;  %v2355_v24 = vpack.c.bf16 %v2577_v16, %v2576_v6 }
 0x203   : > { %2372 = vmatpush1.bf16.msra.mxu0 %v3513_v37  ;;  %v2617_v8 = vunpack.i.h.bf16 %v2615_v59  ;;  %v2616_v22 = vunpack.i.l.bf16 %v2615_v59  ;;  %v2622_v29 = vunpack.i.h.bf16 %v2620_v13  ;;  %v2621_v32 = vunpack.i.l.bf16 %v2620_v13 }
 0x204   : > { %2373 = vmatprep.subr.bf16.mxu0 %v4368_v57  ;;  %v2361_v58 = vpack.c.bf16 %v2587_v28, %v2586_v40 }
 0x205   : > { %v3531_v30 = vpack.c.bf16 %v2617_v8, %v2616_v22  ;;  %v3541_v45 = vpack.c.bf16 %v2622_v29, %v2621_v32 }
 0x206   : > { %v2625_v38 = vpop.permute.xlu1 %2624  ;;  %v2630_v20 = vpop.permute.xlu0 %2629 }
 0x207   : > { %2351 = vmatpush3.bf16.xpose.msk.msra.mxu1 %vm3475_vm2, %v2349_v50  ;;  %2375 = vmatpush1.bf16.msra.mxu0 %v3517_v54  ;;  %v2626_v50 = vunpack.i.l.bf16 %v2625_v38  ;;  %v2632_v16 = vunpack.i.h.bf16 %v2630_v20  ;;  %v2631_v44 = vunpack.i.l.bf16 %v2630_v20 }
 0x208   : > { %2376 = vmatprep.subr.bf16.mxu0 %v4368_v57  ;;  %2354 = vmatprep.subr.msk.bf16.mxu1 %vm3475_vm2, %v2352_v46  ;;  %v2627_v46 = vunpack.i.h.bf16 %v2625_v38 }
 0x209   : > { %v2389_v36 = vpack.c.bf16 %v2632_v16, %v2631_v44 }
 0x20a   : > { %v3545_v59 = vpack.c.bf16 %v2627_v46, %v2626_v50  ;;  %v2635_v2 = vpop.permute.xlu0 %2634  ;;  %v2640_v22 = vpop.permute.xlu1 %2639 }
 0x20b   : > { %2378 = vmatpush1.bf16.msra.mxu0 %v3527_v14  ;;  %v2637_v6 = vunpack.i.h.bf16 %v2635_v2  ;;  %v2636_v8 = vunpack.i.l.bf16 %v2635_v2 }
 0x20c   : > { %2379 = vmatprep.subr.bf16.mxu0 %v4368_v57 }
 0x20d   : > { %v2392_v29 = vpack.c.bf16 %v2637_v6, %v2636_v8 }
 0x20e   : > { %v2645_v13 = vpop.permute.xlu0 %2644 }
 0x20f   : > { %2357 = vmatpush3.bf16.xpose.msk.msra.mxu1 %vm3475_vm2, %v2355_v24  ;;  %2381 = vmatpush1.bf16.msra.mxu0 %v3531_v30  ;;  %v2641_v24 = vunpack.i.l.bf16 %v2640_v22  ;;  %v2647_v32 = vunpack.i.h.bf16 %v2645_v13  ;;  %v2646_v38 = vunpack.i.l.bf16 %v2645_v13 }
 0x210   : > { %2382 = vmatprep.subr.bf16.mxu0 %v4368_v57  ;;  %2360 = vmatprep.subr.msk.bf16.mxu1 %vm3475_vm2, %v2358_v5  ;;  %v2642_v5 = vunpack.i.h.bf16 %v2640_v22 }
 0x212   : > { %v2395_v12 = vpack.c.bf16 %v2642_v5, %v2641_v24  ;;  %v2650_v28 = vpop.permute.xlu0 %2649 }
 0x213   : > { %2384 = vmatpush1.bf16.msra.mxu0 %v3541_v45  ;;  %v2651_v40 = vunpack.i.l.bf16 %v2650_v28 }
 0x214   : > { %2385 = vmatprep.subr.bf16.mxu0 %v4368_v57 }
 0x217   : > { %2363 = vmatpush3.bf16.xpose.msk.msra.mxu1 %vm3475_vm2, %v2361_v58  ;;  %2387 = vmatpush1.bf16.msra.mxu0 %v3545_v59 }
 0x218   : > { %2388 = vmatprep.subr.bf16.mxu0 %v4368_v57  ;;  %2412 = vmatprep.subr.bf16.mxu1 %v4368_v57 }
 0x21b   : > { %2390 = vmatpush1.bf16.msra.mxu0 %v2389_v36 }
 0x21c   : > { %2391 = vmatprep.subr.bf16.mxu0 %v4368_v57 }
 0x21e   : > { %2173 = vmatmul.mubr.msk.f32.vlgmr.msra.gmra.mrb[0].mxu1 %vm669_vm1, %v3283_v47  ;;  %v2398_v47 = vpack.c.bf16 %v2647_v32, %v2646_v38 }
 0x21f   : > { %2174 = vmatprep.mubr.msk.f32.mxu1 %vm669_vm1, %v3304_v4  ;;  %2428 = vmatpush1.bf16.msra.mxu1 %v3501_v55  ;;  %v2652_v55 = vunpack.i.h.bf16 %v2650_v28 }
 0x220   : > { %2393 = vmatpush1.bf16.msra.mxu0 %v2392_v29  ;;  %2413 = vmatprep.subr.bf16.mxu1 %v4368_v57 }
 0x221   : > { %2394 = vmatprep.subr.bf16.mxu0 %v4368_v57 }
 0x222   : > { %2175 = vmatmul.mubr.msk.f32.gmra.mrb[2].mxu1 %vm669_vm1, %v3304_v4  ;;  %v2401_v4 = vpack.c.bf16 %v2652_v55, %v2651_v40 }
 0x223   : > { %2176 = vmatprep.mubr.msk.f32.mxu1 %vm669_vm1, %v3322_v11  ;;  %2429 = vmatpush1.bf16.msra.mxu1 %v3505_v21 }
 0x224   : > { %2396 = vmatpush1.bf16.msra.mxu0 %v2395_v12  ;;  %2414 = vmatprep.subr.bf16.mxu1 %v4368_v57 }
 0x225   : > { %2397 = vmatprep.subr.bf16.mxu0 %v4368_v57 }
 0x226   : > { %2177 = vmatmul.mubr.msk.f32.gmra.mrb[4].mxu1 %vm669_vm1, %v3322_v11 }
 0x227   : > { %2178 = vmatprep.mubr.msk.f32.mxu1 %vm669_vm1, %v3319_v10  ;;  %2430 = vmatpush1.bf16.msra.mxu1 %v3513_v37 }
 0x228   : > { %2399 = vmatpush1.bf16.msra.mxu0 %v2398_v47  ;;  %2415 = vmatprep.subr.bf16.mxu1 %v4368_v57 }
 0x229   : > { %2400 = vmatprep.subr.bf16.mxu0 %v4368_v57 }
 0x22a   : > { %2179 = vmatmul.mubr.msk.f32.gmra.mrb[6].mxu1 %vm669_vm1, %v3319_v10 }
 0x22b   : > { %2180 = vmatprep.mubr.msk.f32.mxu1 %vm669_vm1, %v3346_v19  ;;  %2431 = vmatpush1.bf16.msra.mxu1 %v3517_v54 }
 0x22c   : > { %2402 = vmatpush1.bf16.msra.mxu0 %v2401_v4  ;;  %2416 = vmatprep.subr.bf16.mxu1 %v4368_v57 }
 0x22d   : > { %2403 = vmatprep.subr.bf16.mxu0 %v4368_v57 }
 0x22e   : > { %2181 = vmatmul.mubr.msk.f32.gmra.mrb[8].mxu1 %vm669_vm1, %v3346_v19 }
 0x22f   : > { %2182 = vmatprep.mubr.msk.f32.mxu1 %vm669_vm1, %v3343_v18  ;;  %2432 = vmatpush1.bf16.msra.mxu1 %v3527_v14 }
 0x230   : > { %2417 = vmatprep.subr.bf16.mxu1 %v4368_v57 }
 0x232   : > { %2183 = vmatmul.mubr.msk.f32.gmra.mrb[10].mxu1 %vm669_vm1, %v3343_v18 }
 0x233   : > { %2184 = vmatprep.mubr.msk.f32.mxu1 %vm669_vm1, %v3367_v27  ;;  %2433 = vmatpush1.bf16.msra.mxu1 %v3531_v30 }
 0x234   : > { %2418 = vmatprep.subr.bf16.mxu1 %v4368_v57 }
 0x236   : > { %2185 = vmatmul.mubr.msk.f32.gmra.mrb[12].mxu1 %vm669_vm1, %v3367_v27 }
 0x237   : > { %2186 = vmatprep.mubr.msk.f32.mxu1 %vm669_vm1, %v3364_v26  ;;  %2434 = vmatpush1.bf16.msra.mxu1 %v3541_v45 }
 0x238   : > { %2419 = vmatprep.subr.bf16.mxu1 %v4368_v57 }
 0x23a   : > { %2187 = vmatmul.mubr.msk.f32.gmra.mrb[14].mxu1 %vm669_vm1, %v3364_v26 }
 0x23b   : > { %2188 = vmatprep.mubr.msk.f32.mxu1 %vm669_vm1, %v3385_v35  ;;  %2435 = vmatpush1.bf16.msra.mxu1 %v3545_v59 }
 0x23c   : > { %2420 = vmatprep.subr.bf16.mxu1 %v4368_v57 }
 0x23e   : > { %2189 = vmatmul.mubr.msk.f32.gmra.mrb[16].mxu1 %vm669_vm1, %v3385_v35 }
 0x23f   : > { %2190 = vmatprep.mubr.msk.f32.mxu1 %vm669_vm1, %v3382_v34  ;;  %2436 = vmatpush1.bf16.msra.mxu1 %v2389_v36 }
 0x240   : > { %2421 = vmatprep.subr.bf16.mxu1 %v4368_v57 }
 0x242   : > { %2191 = vmatmul.mubr.msk.f32.gmra.mrb[18].mxu1 %vm669_vm1, %v3382_v34 }
 0x243   : > { %2192 = vmatprep.mubr.msk.f32.mxu1 %vm669_vm1, %v3403_v43  ;;  %2437 = vmatpush1.bf16.msra.mxu1 %v2392_v29 }
 0x244   : > { %2422 = vmatprep.subr.bf16.mxu1 %v4368_v57 }
 0x246   : > { %2193 = vmatmul.mubr.msk.f32.gmra.mrb[20].mxu1 %vm669_vm1, %v3403_v43 }
 0x247   : > { %2194 = vmatprep.mubr.msk.f32.mxu1 %vm669_vm1, %v3400_v42  ;;  %2438 = vmatpush1.bf16.msra.mxu1 %v2395_v12 }
 0x248   : > { %2423 = vmatprep.subr.bf16.mxu1 %v4368_v57 }
 0x24a   : > { %2195 = vmatmul.mubr.msk.f32.gmra.mrb[22].mxu1 %vm669_vm1, %v3400_v42 }
 0x24b   : > { %2196 = vmatprep.mubr.msk.f32.mxu1 %vm669_vm1, %v3426_v53  ;;  %2439 = vmatpush1.bf16.msra.mxu1 %v2398_v47 }
 0x24c   : > { %2424 = vmatprep.subr.bf16.mxu1 %v4368_v57 }
 0x24e   : > { %2197 = vmatmul.mubr.msk.f32.gmra.mrb[24].mxu1 %vm669_vm1, %v3426_v53 }
 0x24f   : > { %2198 = vmatprep.mubr.msk.f32.mxu1 %vm669_vm1, %v3422_v52  ;;  %2440 = vmatpush1.bf16.msra.mxu1 %v2401_v4 }
 0x250   : > { %2425 = vmatprep.subr.bf16.mxu1 %v4368_v57 }
 0x252   : > { %2199 = vmatmul.mubr.msk.f32.gmra.mrb[26].mxu1 %vm669_vm1, %v3422_v52 }
 0x253   : > { %2200 = vmatprep.mubr.msk.f32.mxu1 %vm669_vm1, %v3295_v63 }
 0x256   : > { %2201 = vmatmul.mubr.msk.f32.gmra.mrb[28].mxu1 %vm669_vm1, %v3295_v63 }
 0x257   : > { %2202 = vmatprep.mubr.msk.f32.mxu1 %vm669_vm1, %v3292_v61 }
 0x25a   : > { %2203 = vmatmul.mubr.msk.f32.gmra.mrb[30].mxu1 %vm669_vm1, %v3292_v61 }
 0x25b   : > { %2204 = vmatprep.mubr.msk.f32.mxu1 %vm669_vm1, %v3301_v3 }
 0x25e   : > { %2205 = vmatmul.mubr.msk.f32.gmra.mrb[32].mxu1 %vm669_vm1, %v3301_v3 }
 0x25f   : > { %2206 = vmatprep.mubr.msk.f32.mxu1 %vm669_vm1, %v3298_v1 }
 0x262   : > { %2207 = vmatmul.mubr.msk.f32.gmra.mrb[34].mxu1 %vm669_vm1, %v3298_v1 }
 0x263   : > { %2208 = vmatprep.mubr.msk.f32.mxu1 %vm669_vm1, %v3314_v9 }
 0x266   : > { %2209 = vmatmul.mubr.msk.f32.gmra.mrb[36].mxu1 %vm669_vm1, %v3314_v9 }
 0x267   : > { %2210 = vmatprep.mubr.msk.f32.mxu1 %vm669_vm1, %v3311_v7 }
 0x26a   : > { %2211 = vmatmul.mubr.msk.f32.gmra.mrb[38].mxu1 %vm669_vm1, %v3311_v7 }
 0x26b   : > { %2212 = vmatprep.mubr.msk.f32.mxu1 %vm669_vm1, %v3336_v17 }
 0x26e   : > { %2213 = vmatmul.mubr.msk.f32.gmra.mrb[40].mxu1 %vm669_vm1, %v3336_v17 }
 0x26f   : > { %2214 = vmatprep.mubr.msk.f32.mxu1 %vm669_vm1, %v3333_v15 }
 0x272   : > { %2215 = vmatmul.mubr.msk.f32.gmra.mrb[42].mxu1 %vm669_vm1, %v3333_v15 }
 0x273   : > { %2216 = vmatprep.mubr.msk.f32.mxu1 %vm669_vm1, %v3358_v25 }
 0x276   : > { %2217 = vmatmul.mubr.msk.f32.gmra.mrb[44].mxu1 %vm669_vm1, %v3358_v25 }
 0x277   : > { %2218 = vmatprep.mubr.msk.f32.mxu1 %vm669_vm1, %v3355_v23 }
 0x27a   : > { %2219 = vmatmul.mubr.msk.f32.gmra.mrb[46].mxu1 %vm669_vm1, %v3355_v23 }
 0x27b   : > { %2220 = vmatprep.mubr.msk.f32.mxu1 %vm669_vm1, %v3377_v33 }
 0x27e   : > { %2221 = vmatmul.mubr.msk.f32.gmra.mrb[48].mxu1 %vm669_vm1, %v3377_v33 }
 0x27f   : > { %2222 = vmatprep.mubr.msk.f32.mxu1 %vm669_vm1, %v3374_v31 }
 0x282   : > { %2223 = vmatmul.mubr.msk.f32.gmra.mrb[50].mxu1 %vm669_vm1, %v3374_v31 }
 0x283   : > { %2224 = vmatprep.mubr.msk.f32.mxu1 %vm669_vm1, %v3395_v41 }
 0x286   : > { %2225 = vmatmul.mubr.msk.f32.gmra.mrb[52].mxu1 %vm669_vm1, %v3395_v41 }
 0x287   : > { %2226 = vmatprep.mubr.msk.f32.mxu1 %vm669_vm1, %v3392_v39 }
 0x28a   : > { %2227 = vmatmul.mubr.msk.f32.gmra.mrb[54].mxu1 %vm669_vm1, %v3392_v39 }
 0x28b   : > { %2228 = vmatprep.mubr.msk.f32.mxu1 %vm669_vm1, %v3415_v51 }
 0x28e   : > { %2229 = vmatmul.mubr.msk.f32.gmra.mrb[56].mxu1 %vm669_vm1, %v3415_v51 }
 0x28f   : > { %2230 = vmatprep.mubr.msk.f32.mxu1 %vm669_vm1, %v3412_v49 }
 0x292   : > { %2231 = vmatmul.mubr.msk.f32.gmra.mrb[58].mxu1 %vm669_vm1, %v3412_v49 }
 0x293   : > { %2232 = vmatprep.mubr.msk.f32.mxu1 %vm669_vm1, %v3439_v62 }
 0x296   : > { %2233 = vmatmul.mubr.msk.f32.gmra.mrb[60].mxu1 %vm669_vm1, %v3439_v62 }
 0x297   : > { %2234 = vmatprep.mubr.msk.f32.mxu1 %vm669_vm1, %v3436_v60 }
 0x29a   : > { %2235 = vmatmul.mubr.msk.f32.gmra.mrb[62].mxu1 %vm669_vm1, %v3436_v60 }
 0x2f1   : > { %v3704_v61 = vpop.f32.mrb[0].mxu1 }
 0x2f2   : > { %v3706_v63 = vpop.f32.mrb[1].mxu1 }
 0x2f3   : > { %v1055_v1 = vmax.f32 %v3704_v61, %v3706_v63 }
 0x2f5   : > { %1056 = vmax.xlane.f32.xlu1 %v1055_v1  ;;  %v3710_v3 = vpop.f32.mrb[2].mxu1 }
 0x2f6   : > { %v3712_v7 = vpop.f32.mrb[3].mxu1 }
 0x2f7   : > { %v1058_v9 = vmax.f32 %v3710_v3, %v3712_v7 }
 0x2f9   : > { %1059 = vmax.xlane.f32.xlu0 %v1058_v9  ;;  %v3716_v10 = vpop.f32.mrb[4].mxu1 }
 0x2fa   : > { %v3718_v11 = vpop.f32.mrb[5].mxu1 }
 0x2fb   : > { %v1061_v15 = vmax.f32 %v3716_v10, %v3718_v11 }
 0x2fd   : > { %1062 = vmax.xlane.f32.xlu0 %v1061_v15  ;;  %v3722_v17 = vpop.f32.mrb[6].mxu1 }
 0x2fe   : > { %v3724_v18 = vpop.f32.mrb[7].mxu1 }
 0x2ff   : > { %v1064_v19 = vmax.f32 %v3722_v17, %v3724_v18 }
 0x301   : > { %1065 = vmax.xlane.f32.xlu1 %v1064_v19  ;;  %v3728_v23 = vpop.f32.mrb[8].mxu1 }
 0x302   : > { %v3730_v25 = vpop.f32.mrb[9].mxu1 }
 0x303   : > { %v1067_v26 = vmax.f32 %v3728_v23, %v3730_v25 }
 0x305   : > { %v3734_v27 = vpop.f32.mrb[10].mxu1 }
 0x306   : > { %v3736_v31 = vpop.f32.mrb[11].mxu1 }
 0x307   : > { %v1070_v33 = vmax.f32 %v3734_v27, %v3736_v31 }
 0x309   : > { %v3740_v34 = vpop.f32.mrb[12].mxu1 }
 0x30a   : > { %v3742_v35 = vpop.f32.mrb[13].mxu1 }
 0x30b   : > { %v1073_v39 = vmax.f32 %v3740_v34, %v3742_v35 }
 0x30d   : > { %v3746_v41 = vpop.f32.mrb[14].mxu1 }
 0x30e   : > { %v3748_v42 = vpop.f32.mrb[15].mxu1 }
 0x311   : > { %v3752_v49 = vpop.f32.mrb[16].mxu1 }
 0x312   : > { %2654 = vrot.lane.b32.xlu1 %v3409_v48, %s3028_s9  ;;  %v3756_v51 = vpop.f32.mrb[17].mxu1 }
 0x313   : > { %2659 = vrot.lane.b32.xlu0 %v3432_v56, %s3028_s9  ;;  %v1079_v52 = vmax.f32 %v3752_v49, %v3756_v51 }
 0x315   : > { %v3762_v53 = vpop.f32.mrb[18].mxu1 }
 0x316   : > { %v3764_v60 = vpop.f32.mrb[19].mxu1 }
 0x317   : > { %v1082_v62 = vmax.f32 %v3762_v53, %v3764_v60 }
 0x319   : > { %v3768_v21 = vpop.f32.mrb[20].mxu1 }
 0x31a   : > { %v3770_v37 = vpop.f32.mrb[21].mxu1 }
 0x31b   : > { %v1085_v48 = vmax.f32 %v3768_v21, %v3770_v37 }
 0x31d   : > { %v3774_v54 = vpop.f32.mrb[22].mxu1 }
 0x31e   : > { %v3776_v56 = vpop.f32.mrb[23].mxu1 }
 0x31f   : > { %v1088_v14 = vmax.f32 %v3774_v54, %v3776_v56 }
 0x321   : > { %v3780_v30 = vpop.f32.mrb[24].mxu1 }
 0x322   : > { %v3782_v45 = vpop.f32.mrb[25].mxu1 }
 0x323   : > { %v1091_v46 = vmax.f32 %v3780_v30, %v3782_v45 }
 0x325   : > { %v3786_v50 = vpop.f32.mrb[26].mxu1 }
 0x326   : > { %v3788_v20 = vpop.f32.mrb[27].mxu1 }
 0x327   : > { %4400 = vst [vmem:[#allocation11_spill] sm:$0xff] %v3788_v20 }
 0x329   : > { %v3792_v59 = vpop.f32.mrb[28].mxu1 }
 0x32a   : > { %v3794_v16 = vpop.f32.mrb[29].mxu1 }
 0x32b   : > { %v1097_v44 = vmax.f32 %v3792_v59, %v3794_v16 }
 0x32d   : > { %v3798_v2 = vpop.f32.mrb[30].mxu1 }
 0x32e   : > { %v3800_v36 = vpop.f32.mrb[31].mxu1 }
 0x331   : > { %v3804_v8 = vpop.f32.mrb[32].mxu1 }
 0x332   : > { %1068 = vmax.xlane.f32.xlu0 %v1067_v26  ;;  %v3806_v22 = vpop.f32.mrb[33].mxu1 }
 0x333   : > { %v1103_v13 = vmax.f32 %v3804_v8, %v3806_v22 }
 0x335   : > { %v3810_v5 = vpop.f32.mrb[34].mxu1 }
 0x336   : > { %4401 = vst [vmem:[#allocation12_spill] sm:$0xff] %v3810_v5  ;;  %1071 = vmax.xlane.f32.xlu0 %v1070_v33  ;;  %1074 = vmax.xlane.f32.xlu1 %v1073_v39  ;;  %v3812_v24 = vpop.f32.mrb[35].mxu1 }
 0x337   : > { %4402 = vst [vmem:[#allocation13_spill] sm:$0xff] %v3812_v24  ;;  %v1106_v29 = vmax.f32 %v3810_v5, %v3812_v24  ;;  %v4418_v24 = vmax.f32 %v3786_v50, %v3788_v20  ;;  %v4419_v5 = vmax.f32 %v3798_v2, %v3800_v36 }
 0x339   : > { %v3816_v12 = vpop.f32.mrb[36].mxu1 }
 0x33a   : > { %1080 = vmax.xlane.f32.xlu1 %v1079_v52  ;;  %v3818_v32 = vpop.f32.mrb[37].mxu1 }
 0x33b   : > { %v1109_v38 = vmax.f32 %v3816_v12, %v3818_v32 }
 0x33d   : > { %v3822_v28 = vpop.f32.mrb[38].mxu1 }
 0x33e   : > { %4403 = vst [vmem:[#allocation14_spill] sm:$0xff] %v3822_v28  ;;  %1083 = vmax.xlane.f32.xlu1 %v1082_v62  ;;  %v3824_v47 = vpop.f32.mrb[39].mxu1 }
 0x33f   : > { %4404 = vst [vmem:[#allocation15_spill] sm:$0xff] %v3824_v47  ;;  %v1112_v55 = vmax.f32 %v3822_v28, %v3824_v47 }
 0x341   : > { %v3828_v40 = vpop.f32.mrb[40].mxu1 }
 0x342   : > { %1086 = vmax.xlane.f32.xlu1 %v1085_v48  ;;  %v3830_v4 = vpop.f32.mrb[41].mxu1 }
 0x343   : > { %v1115_v1 = vmax.f32 %v3828_v40, %v3830_v4 }
 0x345   : > { %v3834_v9 = vpop.f32.mrb[42].mxu1 }
 0x346   : > { %4405 = vst [vmem:[#allocation16_spill] sm:$0xff] %v3834_v9  ;;  %1089 = vmax.xlane.f32.xlu1 %v1088_v14  ;;  %v3836_v15 = vpop.f32.mrb[43].mxu1 }
 0x347   : > { %4406 = vst [vmem:[#allocation17_spill] sm:$0xff] %v3836_v15  ;;  %v1118_v19 = vmax.f32 %v3834_v9, %v3836_v15 }
 0x349   : > { %v3840_v26 = vpop.f32.mrb[44].mxu1 }
 0x34a   : > { %1092 = vmax.xlane.f32.xlu1 %v1091_v46  ;;  %v3842_v33 = vpop.f32.mrb[45].mxu1 }
 0x34b   : > { %v1121_v39 = vmax.f32 %v3840_v26, %v3842_v33 }
 0x34c   : > { %2664 = vrot.lane.b32.xlu0 %v3448_v0, %s3028_s9 }
 0x34d   : > { %v3848_v52 = vpop.f32.mrb[46].mxu1 }
 0x34e   : > { %4407 = vst [vmem:[#allocation18_spill] sm:$0xff] %v3848_v52  ;;  %1098 = vmax.xlane.f32.xlu1 %v1097_v44  ;;  %v3850_v62 = vpop.f32.mrb[47].mxu1 }
 0x34f   : > { %4408 = vst [vmem:[#allocation19_spill] sm:$0xff] %v3850_v62  ;;  %v1124_v48 = vmax.f32 %v3848_v52, %v3850_v62 }
 0x351   : > { %v3854_v14 = vpop.f32.mrb[48].mxu1 }
 0x352   : > { %1104 = vmax.xlane.f32.xlu1 %v1103_v13  ;;  %v3856_v46 = vpop.f32.mrb[49].mxu1 }
 0x353   : > { %v1127_v57 = vmax.f32 %v3854_v14, %v3856_v46 }
 0x355   : > { %v3860_v6 = vpop.f32.mrb[50].mxu1 }
 0x356   : > { %4409 = vst [vmem:[#allocation20_spill] sm:$0xff] %v3860_v6  ;;  %1110 = vmax.xlane.f32.xlu1 %v1109_v38  ;;  %v3862_v0 = vpop.f32.mrb[51].mxu1 }
 0x357   : > { %4410 = vst [vmem:[#allocation21_spill] sm:$0xff] %v3862_v0  ;;  %v1130_v44 = vmax.f32 %v3860_v6, %v3862_v0 }
 0x359   : > { %v3866_v58 = vpop.f32.mrb[52].mxu1 }
 0x35a   : > { %1116 = vmax.xlane.f32.xlu1 %v1115_v1  ;;  %v3868_v43 = vpop.f32.mrb[53].mxu1 }
 0x35b   : > { %v1133_v13 = vmax.f32 %v3866_v58, %v3868_v43 }
 0x35d   : > { %v3872_v62 = vpop.f32.mrb[54].mxu1 }
 0x35e   : > { %4411 = vst [vmem:[#allocation22_spill] sm:$0xff] %v3872_v62  ;;  %1122 = vmax.xlane.f32.xlu1 %v1121_v39  ;;  %v3874_v52 = vpop.f32.mrb[55].mxu1 }
 0x35f   : > { %4412 = vst [vmem:[#allocation23_spill] sm:$0xff] %v3874_v52  ;;  %v1136_v38 = vmax.f32 %v3872_v62, %v3874_v52 }
 0x361   : > { %v3878_v15 = vpop.f32.mrb[56].mxu1 }
 0x362   : > { %1128 = vmax.xlane.f32.xlu1 %v1127_v57  ;;  %v3880_v0 = vpop.f32.mrb[57].mxu1  ;;  %v4416_v57 = vmax.f32 %v3746_v41, %v3748_v42 }
 0x363   : > { %v1139_v1 = vmax.f32 %v3878_v15, %v3880_v0 }
 0x365   : > { %v3884_v6 = vpop.f32.mrb[58].mxu1 }
 0x366   : > { %1134 = vmax.xlane.f32.xlu1 %v1133_v13  ;;  %v3886_v9 = vpop.f32.mrb[59].mxu1 }
 0x367   : > { %4413 = vst [vmem:[#allocation24_spill] sm:$0xff] %v3886_v9  ;;  %v1142_v39 = vmax.f32 %v3884_v6, %v3886_v9 }
 0x369   : > { %v3890_v47 = vpop.f32.mrb[60].mxu1 }
 0x36a   : > { %4414 = vst [vmem:[#allocation25_spill] sm:$0xff] %v3890_v47  ;;  %1140 = vmax.xlane.f32.xlu1 %v1139_v1  ;;  %v3892_v52 = vpop.f32.mrb[61].mxu1 }
 0x36b   : > { %4415 = vst [vmem:[#allocation26_spill] sm:$0xff] %v3892_v52  ;;  %1077 = vmax.xlane.f32.xlu0 %v4416_v57  ;;  %v1145_v62 = vmax.f32 %v3890_v47, %v3892_v52 }
 0x36d   : > { %v3899_v28 = vpop.f32.mrb[62].mxu1 }
 0x36e   : > { %1143 = vmax.xlane.f32.xlu1 %v1142_v39  ;;  %v3901_v13 = vpop.f32.mrb[63].mxu1 }
 0x36f   : > { %4417 = vst [vmem:[#allocation27_spill] sm:$0xff] %v3901_v13  ;;  %1095 = vmax.xlane.f32.xlu0 %v4418_v24  ;;  %v1148_v1 = vmax.f32 %v3899_v28, %v3901_v13 }
 0x373   : > { %1101 = vmax.xlane.f32.xlu0 %v4419_v5 }
 0x377   : > { %1107 = vmax.xlane.f32.xlu0 %v1106_v29 }
 0x37b   : > { %1113 = vmax.xlane.f32.xlu0 %v1112_v55 }
 0x37f   : > { %1119 = vmax.xlane.f32.xlu0 %v1118_v19 }
 0x382   : > { %v1057_v57 = vpop.xlane.xlu1 %1056 }
 0x383   : > { %v1151_v52 = vsub.f32 %v3704_v61, %v1057_v57  ;;  %v1152_v39 = vsub.f32 %v3706_v63, %v1057_v57  ;;  %1125 = vmax.xlane.f32.xlu0 %v1124_v48 }
 0x385   : > { %v1215_v47 = vmul.f32 1.442695, %v1151_v52  ;;  %v1217_v9 = vmul.f32 1.442695, %v1152_v39 }
 0x386   : > { %v1060_v20 = vpop.xlane.xlu0 %1059 }
 0x387   : > { %2668 = vpow2.f32 %v1215_v47  ;;  %v1153_v24 = vsub.f32 %v3710_v3, %v1060_v20  ;;  %v1154_v13 = vsub.f32 %v3712_v7, %v1060_v20  ;;  %1131 = vmax.xlane.f32.xlu0 %v1130_v44 }
 0x388   : > { %2670 = vpow2.f32 %v1217_v9 }
 0x389   : > { %v1219_v5 = vmul.f32 1.442695, %v1153_v24  ;;  %v1221_v29 = vmul.f32 1.442695, %v1154_v13 }
 0x38a   : > { %v1063_v55 = vpop.xlane.xlu0 %1062 }
 0x38b   : > { %2672 = vpow2.f32 %v1219_v5  ;;  %v1155_v19 = vsub.f32 %v3716_v10, %v1063_v55  ;;  %v1156_v61 = vsub.f32 %v3718_v11, %v1063_v55  ;;  %1137 = vmax.xlane.f32.xlu0 %v1136_v38 }
 0x38c   : > { %2674 = vpow2.f32 %v1221_v29  ;;  %v4420_v29 = vmov 0.0|0.0  }
 0x38d   : > { %v1223_v63 = vmul.f32 1.442695, %v1155_v19  ;;  %v1225_v52 = vmul.f32 1.442695, %v1156_v61 }
 0x38e   : > { %v1066_v48 = vpop.xlane.xlu1 %1065  ;;  %v2660_v44 = vpop.permute.xlu0 %2659 }
 0x38f   : > { %2676 = vpow2.f32 %v1223_v63  ;;  %v1157_v3 = vsub.f32 %v3722_v17, %v1066_v48  ;;  %1146 = vmax.xlane.f32.xlu0 %v1145_v62  ;;  %v1158_v7 = vsub.f32 %v3724_v18, %v1066_v48  ;;  %v2662_v62 = vunpack.i.h.bf16 %v2660_v44 }
 0x390   : > { %2678 = vpow2.f32 %v1225_v52  ;;  %v2661_v39 = vunpack.i.l.bf16 %v2660_v44 }
 0x391   : > { %v3919_v20 = vpop.eup %2668  ;;  %v1227_v47 = vmul.f32 1.442695, %v1157_v3  ;;  %v1229_v10 = vmul.f32 1.442695, %v1158_v7 }
 0x392   : > { %v2671_v9 = vpop.eup %2670  ;;  %v2655_v13 = vpop.permute.xlu1 %2654  ;;  %v2407_v55 = vpack.c.bf16 %v2662_v62, %v2661_v39 }
 0x393   : > { %2680 = vpow2.f32 %v1227_v47  ;;  %1599 = vmatprep.mubr.f32.mxu0 %v2671_v9  ;;  %v2657_v11 = vunpack.i.h.bf16 %v2655_v13  ;;  %v2656_v38 = vunpack.i.l.bf16 %v2655_v13  ;;  %1149 = vmax.xlane.f32.xlu0 %v1148_v1  ;;  %v1343_v57 = vadd.f32 %v2671_v9, %v3919_v20 }
 0x394   : > { %2682 = vpow2.f32 %v1229_v10 }
 0x395   : > { %v3922_v17 = vpop.eup %2672  ;;  %v2404_v18 = vpack.c.bf16 %v2657_v11, %v2656_v38  ;;  %1344 = vadd.xlane.f32.xlu1 %v1343_v57 }
 0x396   : > { %v3924_v24 = vpop.eup %2674 }
 0x397   : > { %2405 = vmatpush1.bf16.msra.mxu0 %v2404_v18  ;;  %2441 = vmatpush1.bf16.msra.mxu1 %v2404_v18  ;;  %v1346_v5 = vadd.f32 %v3924_v24, %v3922_v17 }
 0x398   : > { %2406 = vmatprep.subr.bf16.mxu0 %v4420_v29  ;;  %2426 = vmatprep.subr.bf16.mxu1 %v4420_v29 }
 0x399   : > { %v3930_v1 = vpop.eup %2676  ;;  %1347 = vadd.xlane.f32.xlu0 %v1346_v5 }
 0x39a   : > { %v3932_v19 = vpop.eup %2678 }
 0x39b   : > { %2408 = vmatpush1.bf16.msra.mxu0 %v2407_v55  ;;  %2442 = vmatpush1.bf16.msra.mxu1 %v2407_v55  ;;  %v1349_v61 = vadd.f32 %v3932_v19, %v3930_v1 }
 0x39c   : > { %2409 = vmatprep.subr.bf16.mxu0 %v4420_v29  ;;  %2427 = vmatprep.subr.bf16.mxu1 %v4420_v29 }
 0x39d   : > { %v3938_v63 = vpop.eup %2680  ;;  %1350 = vadd.xlane.f32.xlu1 %v1349_v61 }
 0x39e   : > { %v3940_v52 = vpop.eup %2682 }
 0x39f   : > { %v1352_v48 = vadd.f32 %v3940_v52, %v3938_v63 }
 0x3a1   : > { %1353 = vadd.xlane.f32.xlu0 %v1352_v48 }
 0x3bf   : > { %v1069_v3 = vpop.xlane.xlu0 %1068 }
 0x3c0   : > { %v1159_v7 = vsub.f32 %v3728_v23, %v1069_v3  ;;  %v1160_v47 = vsub.f32 %v3730_v25, %v1069_v3 }
 0x3c2   : > { %v1231_v9 = vmul.f32 1.442695, %v1159_v7  ;;  %v1233_v44 = vmul.f32 1.442695, %v1160_v47 }
 0x3c3   : > { %v1072_v10 = vpop.xlane.xlu0 %1071  ;;  %v1075_v13 = vpop.xlane.xlu1 %1074 }
 0x3c4   : > { %2684 = vpow2.f32 %v1231_v9  ;;  %v1161_v11 = vsub.f32 %v3734_v27, %v1072_v10  ;;  %v1162_v38 = vsub.f32 %v3736_v31, %v1072_v10  ;;  %v1163_v57 = vsub.f32 %v3740_v34, %v1075_v13 }
 0x3c5   : > { %2686 = vpow2.f32 %v1233_v44  ;;  %v1164_v62 = vsub.f32 %v3742_v35, %v1075_v13 }
 0x3c6   : > { %v1235_v39 = vmul.f32 1.442695, %v1161_v11  ;;  %v1237_v18 = vmul.f32 1.442695, %v1162_v38  ;;  %v1239_v5 = vmul.f32 1.442695, %v1163_v57 }
 0x3c7   : > { %v1241_v23 = vmul.f32 1.442695, %v1164_v62  ;;  %v2665_v29 = vpop.permute.xlu0 %2664  ;;  %v1081_v25 = vpop.xlane.xlu1 %1080 }
 0x3c8   : > { %2688 = vpow2.f32 %v1235_v39  ;;  %v2667_v55 = vunpack.i.h.bf16 %v2665_v29  ;;  %v2666_v61 = vunpack.i.l.bf16 %v2665_v29  ;;  %v1167_v48 = vsub.f32 %v3752_v49, %v1081_v25 }
 0x3c9   : > { %2690 = vpow2.f32 %v1237_v18  ;;  %v1168_v27 = vsub.f32 %v3756_v51, %v1081_v25 }
 0x3ca   : > { %2692 = vpow2.f32 %v1239_v5  ;;  %v2410_v31 = vpack.c.bf16 %v2667_v55, %v2666_v61  ;;  %v1247_v34 = vmul.f32 1.442695, %v1167_v48 }
 0x3cb   : > { %2694 = vpow2.f32 %v1241_v23  ;;  %v1249_v3 = vmul.f32 1.442695, %v1168_v27  ;;  %v1084_v35 = vpop.xlane.xlu1 %1083 }
 0x3cc   : > { %2696 = vpow2.f32 %v1247_v34  ;;  %v1169_v7 = vsub.f32 %v3762_v53, %v1084_v35  ;;  %v1170_v47 = vsub.f32 %v3764_v60, %v1084_v35  ;;  %2411 = vmatpush1.bf16.msra.mxu0 %v2410_v31  ;;  %2443 = vmatpush1.bf16.msra.mxu1 %v2410_v31 }
 0x3cd   : > { %2698 = vpow2.f32 %v1249_v3 }
 0x3ce   : > { %v2685_v9 = vpop.eup %2684  ;;  %v1251_v44 = vmul.f32 1.442695, %v1169_v7  ;;  %v1253_v49 = vmul.f32 1.442695, %v1170_v47 }
 0x3cf   : > { %v2687_v10 = vpop.eup %2686  ;;  %1600 = vmatmul.mubr.f32.vlgmr.msra.gmra.mrb[32].mxu0 %v3919_v20  ;;  %v1087_v51 = vpop.xlane.xlu1 %1086 }
 0x3d0   : > { %2700 = vpow2.f32 %v1251_v44  ;;  %v1171_v13 = vsub.f32 %v3768_v21, %v1087_v51  ;;  %v1172_v11 = vsub.f32 %v3770_v37, %v1087_v51  ;;  %1604 = vmatprep.mubr.f32.mxu0 %v3924_v24  ;;  %v1355_v53 = vadd.f32 %v2687_v10, %v2685_v9 }
 0x3d1   : > { %2702 = vpow2.f32 %v1253_v49 }
 0x3d2   : > { %v2689_v60 = vpop.eup %2688  ;;  %v1255_v38 = vmul.f32 1.442695, %v1171_v13  ;;  %v1257_v57 = vmul.f32 1.442695, %v1172_v11  ;;  %1356 = vadd.xlane.f32.xlu1 %v1355_v53 }
 0x3d3   : > { %v2691_v62 = vpop.eup %2690  ;;  %1605 = vmatmul.mubr.f32.gmra.mrb[34].mxu0 %v3922_v17  ;;  %v1090_v39 = vpop.xlane.xlu1 %1089 }
 0x3d4   : > { %v3959_v18 = vpop.eup %2692  ;;  %2704 = vpow2.f32 %v1255_v38  ;;  %v1173_v20 = vsub.f32 %v3774_v54, %v1090_v39  ;;  %v1174_v21 = vsub.f32 %v3776_v56, %v1090_v39  ;;  %1609 = vmatprep.mubr.f32.mxu0 %v3932_v19  ;;  %v1358_v37 = vadd.f32 %v2691_v62, %v2689_v60 }
 0x3d5   : > { %v2695_v24 = vpop.eup %2694  ;;  %2706 = vpow2.f32 %v1257_v57 }
 0x3d6   : > { %v3964_v5 = vpop.eup %2696  ;;  %v1259_v23 = vmul.f32 1.442695, %v1173_v20  ;;  %v1261_v29 = vmul.f32 1.442695, %v1174_v21  ;;  %v1361_v25 = vadd.f32 %v2695_v24, %v3959_v18  ;;  %1359 = vadd.xlane.f32.xlu0 %v1358_v37 }
 0x3d7   : > { %v3967_v17 = vpop.eup %2698  ;;  %1610 = vmatmul.mubr.f32.gmra.mrb[36].mxu0 %v3930_v1  ;;  %v1093_v55 = vpop.xlane.xlu1 %1092 }
 0x3d8   : > { %2708 = vpow2.f32 %v1259_v23  ;;  %1362 = vadd.xlane.f32.xlu1 %v1361_v25  ;;  %v1175_v54 = vsub.f32 %v3780_v30, %v1093_v55  ;;  %v1176_v56 = vsub.f32 %v3782_v45, %v1093_v55  ;;  %1614 = vmatprep.mubr.f32.mxu0 %v3940_v52  ;;  %v1367_v19 = vadd.f32 %v3967_v17, %v3964_v5 }
 0x3d9   : > { %2710 = vpow2.f32 %v1261_v29 }
 0x3da   : > { %v3975_v61 = vpop.eup %2700  ;;  %v1263_v48 = vmul.f32 1.442695, %v1175_v54  ;;  %v1265_v27 = vmul.f32 1.442695, %v1176_v56 }
 0x3db   : > { %v3977_v31 = vpop.eup %2702  ;;  %1615 = vmatmul.mubr.f32.gmra.mrb[38].mxu0 %v3938_v63  ;;  %v1099_v1 = vpop.xlane.xlu1 %1098 }
 0x3dc   : > { %2712 = vpow2.f32 %v1263_v48  ;;  %1368 = vadd.xlane.f32.xlu1 %v1367_v19  ;;  %v1179_v30 = vsub.f32 %v3792_v59, %v1099_v1  ;;  %v1180_v45 = vsub.f32 %v3794_v16, %v1099_v1  ;;  %1619 = vmatprep.mubr.f32.mxu0 %v2687_v10  ;;  %v3984_v52 = vadd.f32 %v3977_v31, %v3975_v61 }
 0x3dd   : > { %2714 = vpow2.f32 %v1265_v27 }
 0x3de   : > { %v3986_v34 = vpop.eup %2704  ;;  %v1271_v3 = vmul.f32 1.442695, %v1179_v30  ;;  %v1273_v35 = vmul.f32 1.442695, %v1180_v45 }
 0x3df   : > { %v3988_v7 = vpop.eup %2706  ;;  %1620 = vmatmul.mubr.f32.gmra.mrb[40].mxu0 %v2685_v9  ;;  %v1105_v63 = vpop.xlane.xlu1 %1104 }
 0x3e0   : > { %2716 = vpow2.f32 %v1271_v3  ;;  %v1183_v47 = vsub.f32 %v3804_v8, %v1105_v63  ;;  %v1184_v59 = vsub.f32 %v3806_v22, %v1105_v63  ;;  %1624 = vmatprep.mubr.f32.mxu0 %v2691_v62  ;;  %v1373_v16 = vadd.f32 %v3988_v7, %v3986_v34 }
 0x3e1   : > { %2718 = vpow2.f32 %v1273_v35 }
 0x3e2   : > { %v3994_v44 = vpop.eup %2708  ;;  %v1279_v49 = vmul.f32 1.442695, %v1183_v47  ;;  %v1281_v10 = vmul.f32 1.442695, %v1184_v59  ;;  %1374 = vadd.xlane.f32.xlu1 %v1373_v16 }
 0x3e3   : > { %v3996_v51 = vpop.eup %2710  ;;  %1625 = vmatmul.mubr.f32.gmra.mrb[42].mxu0 %v2689_v60  ;;  %v1111_v9 = vpop.xlane.xlu1 %1110 }
 0x3e4   : > { %2720 = vpow2.f32 %v1279_v49  ;;  %v1187_v13 = vsub.f32 %v3816_v12, %v1111_v9  ;;  %v1188_v8 = vsub.f32 %v3818_v32, %v1111_v9  ;;  %1629 = vmatprep.mubr.f32.mxu0 %v2695_v24  ;;  %v4002_v22 = vadd.f32 %v3996_v51, %v3994_v44 }
 0x3e5   : > { %2722 = vpow2.f32 %v1281_v10 }
 0x3e6   : > { %v4004_v11 = vpop.eup %2712  ;;  %v1287_v53 = vmul.f32 1.442695, %v1187_v13  ;;  %v1289_v38 = vmul.f32 1.442695, %v1188_v8 }
 0x3e7   : > { %v4006_v57 = vpop.eup %2714  ;;  %1630 = vmatmul.mubr.f32.gmra.mrb[44].mxu0 %v3959_v18  ;;  %v1117_v60 = vpop.xlane.xlu1 %1116 }
 0x3e8   : > { %2724 = vpow2.f32 %v1287_v53  ;;  %v1191_v12 = vsub.f32 %v3828_v40, %v1117_v60  ;;  %v1192_v32 = vsub.f32 %v3830_v4, %v1117_v60  ;;  %v1379_v62 = vadd.f32 %v4006_v57, %v4004_v11 }
 0x3e9   : > { %2726 = vpow2.f32 %v1289_v38 }
 0x3ea   : > { %v4013_v39 = vpop.eup %2716  ;;  %v1295_v20 = vmul.f32 1.442695, %v1191_v12  ;;  %v1297_v21 = vmul.f32 1.442695, %v1192_v32  ;;  %1380 = vadd.xlane.f32.xlu1 %v1379_v62  ;;  %v4421_v32 = vld [vmem:[#allocation24_spill] sm:$0xff] }
 0x3eb   : > { %v4015_v37 = vpop.eup %2718  ;;  %v1123_v24 = vpop.xlane.xlu1 %1122 }
 0x3ec   : > { %2728 = vpow2.f32 %v1295_v20  ;;  %v1195_v18 = vsub.f32 %v3840_v26, %v1123_v24  ;;  %v1196_v23 = vsub.f32 %v3842_v33, %v1123_v24  ;;  %v1385_v40 = vadd.f32 %v4015_v37, %v4013_v39 }
 0x3ed   : > { %2730 = vpow2.f32 %v1297_v21  ;;  %v4422_v21 = vld [vmem:[#allocation11_spill] sm:$0xff] }
 0x3ee   : > { %v4021_v4 = vpop.eup %2720  ;;  %v1303_v29 = vmul.f32 1.442695, %v1195_v18  ;;  %v1305_v25 = vmul.f32 1.442695, %v1196_v23  ;;  %1386 = vadd.xlane.f32.xlu1 %v1385_v40 }
 0x3ef   : > { %v4023_v55 = vpop.eup %2722  ;;  %v1129_v54 = vpop.xlane.xlu1 %1128 }
 0x3f0   : > { %2732 = vpow2.f32 %v1303_v29  ;;  %v1199_v56 = vsub.f32 %v3854_v14, %v1129_v54  ;;  %v1200_v19 = vsub.f32 %v3856_v46, %v1129_v54  ;;  %v1391_v26 = vadd.f32 %v4023_v55, %v4021_v4 }
 0x3f1   : > { %2734 = vpow2.f32 %v1305_v25 }
 0x3f2   : > { %v4029_v33 = vpop.eup %2724  ;;  %v1311_v48 = vmul.f32 1.442695, %v1199_v56  ;;  %v1313_v27 = vmul.f32 1.442695, %v1200_v19  ;;  %1392 = vadd.xlane.f32.xlu1 %v1391_v26 }
 0x3f3   : > { %v4031_v1 = vpop.eup %2726  ;;  %v1135_v30 = vpop.xlane.xlu1 %1134 }
 0x3f4   : > { %2736 = vpow2.f32 %v1311_v48  ;;  %v1203_v45 = vsub.f32 %v3866_v58, %v1135_v30  ;;  %v1204_v3 = vsub.f32 %v3868_v43, %v1135_v30  ;;  %v1397_v14 = vadd.f32 %v4031_v1, %v4029_v33 }
 0x3f5   : > { %2738 = vpow2.f32 %v1313_v27 }
 0x3f6   : > { %v4037_v46 = vpop.eup %2728  ;;  %v1319_v35 = vmul.f32 1.442695, %v1203_v45  ;;  %v1321_v63 = vmul.f32 1.442695, %v1204_v3  ;;  %1398 = vadd.xlane.f32.xlu1 %v1397_v14  ;;  %v4423_v14 = vld [vmem:[#allocation12_spill] sm:$0xff] }
 0x3f7   : > { %v4039_v47 = vpop.eup %2730  ;;  %v1141_v59 = vpop.xlane.xlu1 %1140 }
 0x3f8   : > { %2740 = vpow2.f32 %v1319_v35  ;;  %v1207_v16 = vsub.f32 %v3878_v15, %v1141_v59  ;;  %v1208_v49 = vsub.f32 %v3880_v0, %v1141_v59  ;;  %v1078_v58 = vpop.xlane.xlu0 %1077  ;;  %v1403_v43 = vadd.f32 %v4039_v47, %v4037_v46 }
 0x3f9   : > { %2742 = vpow2.f32 %v1321_v63  ;;  %v1165_v10 = vsub.f32 %v3746_v41, %v1078_v58  ;;  %v1166_v9 = vsub.f32 %v3748_v42, %v1078_v58  ;;  %v4424_v63 = vld [vmem:[#allocation13_spill] sm:$0xff] }
 0x3fa   : > { %v4047_v13 = vpop.eup %2732  ;;  %v1327_v8 = vmul.f32 1.442695, %v1207_v16  ;;  %v1329_v53 = vmul.f32 1.442695, %v1208_v49  ;;  %1404 = vadd.xlane.f32.xlu1 %v1403_v43 }
 0x3fb   : > { %v4049_v38 = vpop.eup %2734  ;;  %v1243_v60 = vmul.f32 1.442695, %v1165_v10  ;;  %v1245_v15 = vmul.f32 1.442695, %v1166_v9  ;;  %v1144_v12 = vpop.xlane.xlu1 %1143 }
 0x3fc   : > { %2744 = vpow2.f32 %v1327_v8  ;;  %v1209_v0 = vsub.f32 %v3884_v6, %v1144_v12  ;;  %v1210_v62 = vsub.f32 %v4421_v32, %v1144_v12  ;;  %v1096_v20 = vpop.xlane.xlu0 %1095  ;;  %v1409_v41 = vadd.f32 %v4049_v38, %v4047_v13  ;;  %v4425_v8 = vld [vmem:[#allocation14_spill] sm:$0xff] }
 0x3fd   : > { %2746 = vpow2.f32 %v1329_v53  ;;  %v1177_v42 = vsub.f32 %v3786_v50, %v1096_v20  ;;  %v1178_v24 = vsub.f32 %v4422_v21, %v1096_v20 }
 0x3fe   : > { %v4057_v18 = vpop.eup %2736  ;;  %2748 = vpow2.f32 %v1243_v60  ;;  %v1331_v23 = vmul.f32 1.442695, %v1209_v0  ;;  %v1333_v40 = vmul.f32 1.442695, %v1210_v62  ;;  %1410 = vadd.xlane.f32.xlu1 %v1409_v41  ;;  %v4426_v60 = vld [vmem:[#allocation15_spill] sm:$0xff] }
 0x3ff   : > { %v4059_v29 = vpop.eup %2738  ;;  %2750 = vpow2.f32 %v1245_v15  ;;  %v1267_v6 = vmul.f32 1.442695, %v1177_v42  ;;  %v1269_v25 = vmul.f32 1.442695, %v1178_v24 }
 0x400   : > { %2752 = vpow2.f32 %v1331_v23  ;;  %v1102_v54 = vpop.xlane.xlu0 %1101  ;;  %v1415_v56 = vadd.f32 %v4059_v29, %v4057_v18  ;;  %v4427_v23 = vld [vmem:[#allocation16_spill] sm:$0xff] }
 0x401   : > { %2754 = vpow2.f32 %v1333_v40  ;;  %v1181_v50 = vsub.f32 %v3798_v2, %v1102_v54  ;;  %v1182_v19 = vsub.f32 %v3800_v36, %v1102_v54 }
 0x402   : > { %v4065_v26 = vpop.eup %2740  ;;  %2756 = vpow2.f32 %v1267_v6  ;;  %1416 = vadd.xlane.f32.xlu1 %v1415_v56  ;;  %v4428_v6 = vld [vmem:[#allocation17_spill] sm:$0xff] }
 0x403   : > { %v4067_v48 = vpop.eup %2742  ;;  %2758 = vpow2.f32 %v1269_v25  ;;  %v1275_v27 = vmul.f32 1.442695, %v1181_v50  ;;  %v1277_v30 = vmul.f32 1.442695, %v1182_v19 }
 0x404   : > { %v1108_v45 = vpop.xlane.xlu0 %1107  ;;  %v1421_v3 = vadd.f32 %v4067_v48, %v4065_v26 }
 0x405   : > { %2760 = vpow2.f32 %v1275_v27  ;;  %v1185_v35 = vsub.f32 %v4423_v14, %v1108_v45  ;;  %v1186_v2 = vsub.f32 %v4424_v63, %v1108_v45 }
 0x406   : > { %v4073_v59 = vpop.eup %2744  ;;  %2762 = vpow2.f32 %v1277_v30  ;;  %1422 = vadd.xlane.f32.xlu1 %v1421_v3  ;;  %v4429_v30 = vld [vmem:[#allocation18_spill] sm:$0xff]  ;;  %v4430_v3 = vld [vmem:[#allocation19_spill] sm:$0xff] }
 0x407   : > { %v4075_v36 = vpop.eup %2746  ;;  %v1283_v16 = vmul.f32 1.442695, %v1185_v35  ;;  %v1285_v49 = vmul.f32 1.442695, %v1186_v2 }
 0x408   : > { %v2749_v58 = vpop.eup %2748  ;;  %v1114_v43 = vpop.xlane.xlu0 %1113  ;;  %v1427_v10 = vadd.f32 %v4075_v36, %v4073_v59 }
 0x409   : > { %v2751_v9 = vpop.eup %2750  ;;  %2764 = vpow2.f32 %v1283_v16  ;;  %v1189_v53 = vsub.f32 %v4425_v8, %v1114_v43  ;;  %v1190_v15 = vsub.f32 %v4426_v60, %v1114_v43 }
 0x40a   : > { %v4081_v12 = vpop.eup %2752  ;;  %2766 = vpow2.f32 %v1285_v49  ;;  %1634 = vmatprep.mubr.f32.mxu0 %v2751_v9  ;;  %1428 = vadd.xlane.f32.xlu1 %v1427_v10  ;;  %v1364_v0 = vadd.f32 %v2751_v9, %v2749_v58 }
 0x40b   : > { %v4083_v32 = vpop.eup %2754  ;;  %v1291_v62 = vmul.f32 1.442695, %v1189_v53  ;;  %v1293_v20 = vmul.f32 1.442695, %v1190_v15  ;;  %1635 = vmatmul.mubr.f32.gmra.mrb[46].mxu0 %v2749_v58  ;;  %v4432_v58 = vld [vmem:[#allocation21_spill] sm:$0xff]  ;;  %v4434_v15 = vld [vmem:[#allocation23_spill] sm:$0xff] }
 0x40c   : > { %v4085_v41 = vpop.eup %2756  ;;  %1639 = vmatprep.mubr.f32.mxu0 %v3967_v17  ;;  %1365 = vadd.xlane.f32.xlu0 %v1364_v0  ;;  %v1120_v42 = vpop.xlane.xlu0 %1119  ;;  %v4090_v21 = vadd.f32 %v4083_v32, %v4081_v12 }
 0x40d   : > { %v2759_v24 = vpop.eup %2758  ;;  %2768 = vpow2.f32 %v1291_v62  ;;  %v1193_v40 = vsub.f32 %v4427_v23, %v1120_v42  ;;  %v1194_v25 = vsub.f32 %v4428_v6, %v1120_v42 }
 0x40e   : > { %2770 = vpow2.f32 %v1293_v20  ;;  %v1382_v54 = vadd.f32 %v2759_v24, %v4085_v41 }
 0x40f   : > { %v4095_v56 = vpop.eup %2760  ;;  %v1299_v50 = vmul.f32 1.442695, %v1193_v40  ;;  %v1301_v19 = vmul.f32 1.442695, %v1194_v25  ;;  %1640 = vmatmul.mubr.f32.gmra.mrb[48].mxu0 %v3964_v5  ;;  %v4435_v40 = vld [vmem:[#allocation25_spill] sm:$0xff]  ;;  %v4436_v25 = vld [vmem:[#allocation26_spill] sm:$0xff] }
 0x410   : > { %v4098_v17 = vpop.eup %2762  ;;  %1644 = vmatprep.mubr.f32.mxu0 %v3977_v31  ;;  %1371 = vadd.xlane.f32.xlu0 %v3984_v52  ;;  %v1126_v27 = vpop.xlane.xlu0 %1125  ;;  %v4431_v52 = vld [vmem:[#allocation20_spill] sm:$0xff] }
 0x411   : > { %2772 = vpow2.f32 %v1299_v50  ;;  %v1197_v45 = vsub.f32 %v4429_v30, %v1126_v27  ;;  %v1198_v14 = vsub.f32 %v4430_v3, %v1126_v27  ;;  %v1388_v35 = vadd.f32 %v4098_v17, %v4095_v56  ;;  %v4437_v3 = vld [vmem:[#allocation27_spill] sm:$0xff] }
 0x412   : > { %2774 = vpow2.f32 %v1301_v19 }
 0x413   : > { %v4106_v63 = vpop.eup %2764  ;;  %v1307_v2 = vmul.f32 1.442695, %v1197_v45  ;;  %v1309_v5 = vmul.f32 1.442695, %v1198_v14  ;;  %1645 = vmatmul.mubr.f32.gmra.mrb[50].mxu0 %v3975_v61 }
 0x414   : > { %v4109_v16 = vpop.eup %2766  ;;  %1649 = vmatprep.mubr.f32.mxu0 %v3988_v7  ;;  %1377 = vadd.xlane.f32.xlu0 %v4002_v22  ;;  %v1132_v31 = vpop.xlane.xlu0 %1131  ;;  %v4433_v22 = vld [vmem:[#allocation22_spill] sm:$0xff] }
 0x415   : > { %2776 = vpow2.f32 %v1307_v2  ;;  %v1201_v49 = vsub.f32 %v4431_v52, %v1132_v31  ;;  %v1202_v43 = vsub.f32 %v4432_v58, %v1132_v31  ;;  %v1394_v10 = vadd.f32 %v4109_v16, %v4106_v63 }
 0x416   : > { %2778 = vpow2.f32 %v1309_v5 }
 0x417   : > { %v4117_v9 = vpop.eup %2768  ;;  %v1315_v8 = vmul.f32 1.442695, %v1201_v49  ;;  %v1317_v61 = vmul.f32 1.442695, %v1202_v43  ;;  %1650 = vmatmul.mubr.f32.gmra.mrb[52].mxu0 %v3986_v34 }
 0x418   : > { %v4120_v53 = vpop.eup %2770  ;;  %1654 = vmatprep.mubr.f32.mxu0 %v3996_v51  ;;  %1383 = vadd.xlane.f32.xlu0 %v1382_v54  ;;  %v1138_v7 = vpop.xlane.xlu0 %1137 }
 0x419   : > { %2780 = vpow2.f32 %v1315_v8  ;;  %v1205_v60 = vsub.f32 %v4433_v22, %v1138_v7  ;;  %v1206_v0 = vsub.f32 %v4434_v15, %v1138_v7  ;;  %v1400_v62 = vadd.f32 %v4120_v53, %v4117_v9 }
 0x41a   : > { %2782 = vpow2.f32 %v1317_v61  ;;  %v2862_v61 = vld [vmem:[%s3203_s26 + $0x10] sm:$0xff] }
 0x41b   : > { %v4127_v20 = vpop.eup %2772  ;;  %v1323_v42 = vmul.f32 1.442695, %v1205_v60  ;;  %v1325_v23 = vmul.f32 1.442695, %v1206_v0  ;;  %1655 = vmatmul.mubr.f32.gmra.mrb[54].mxu0 %v3994_v44 }
 0x41c   : > { %v4130_v34 = vpop.eup %2774  ;;  %1659 = vmatprep.mubr.f32.mxu0 %v4006_v57  ;;  %1389 = vadd.xlane.f32.xlu0 %v1388_v35  ;;  %v1147_v51 = vpop.xlane.xlu0 %1146 }
 0x41d   : > { %2784 = vpow2.f32 %v1323_v42  ;;  %v1211_v6 = vsub.f32 %v4435_v40, %v1147_v51  ;;  %v1212_v54 = vsub.f32 %v4436_v25, %v1147_v51  ;;  %v1406_v50 = vadd.f32 %v4130_v34, %v4127_v20  ;;  %v2864_v40 = vld [vmem:[%s3203_s26 + $0x20] sm:$0xff] }
 0x41e   : > { %2786 = vpow2.f32 %v1325_v23 }
 0x41f   : > { %v2777_v19 = vpop.eup %2776  ;;  %v1335_v27 = vmul.f32 1.442695, %v1211_v6  ;;  %v1337_v30 = vmul.f32 1.442695, %v1212_v54  ;;  %1660 = vmatmul.mubr.f32.gmra.mrb[56].mxu0 %v4004_v11 }
 0x420   : > { %v2779_v44 = vpop.eup %2778  ;;  %1664 = vmatprep.mubr.f32.mxu0 %v2759_v24  ;;  %1395 = vadd.xlane.f32.xlu0 %v1394_v10  ;;  %v1150_v57 = vpop.xlane.xlu0 %1149 }
 0x421   : > { %2788 = vpow2.f32 %v1335_v27  ;;  %v1213_v45 = vsub.f32 %v3899_v28, %v1150_v57  ;;  %v1214_v14 = vsub.f32 %v4437_v3, %v1150_v57  ;;  %v1412_v35 = vadd.f32 %v2779_v44, %v2777_v19 }
 0x422   : > { %2790 = vpow2.f32 %v1337_v30 }
 0x423   : > { %v2781_v2 = vpop.eup %2780  ;;  %v1339_v5 = vmul.f32 1.442695, %v1213_v45  ;;  %v1341_v31 = vmul.f32 1.442695, %v1214_v14  ;;  %1665 = vmatmul.mubr.f32.gmra.mrb[58].mxu0 %v4085_v41 }
 0x424   : > { %v2783_v52 = vpop.eup %2782  ;;  %1669 = vmatprep.mubr.f32.mxu0 %v4015_v37  ;;  %1401 = vadd.xlane.f32.xlu0 %v1400_v62  ;;  %v2863_v62 = vld [vmem:[%s3203_s26 + $0x18] sm:$0xff] }
 0x425   : > { %2792 = vpow2.f32 %v1339_v5  ;;  %v1418_v11 = vadd.f32 %v2783_v52, %v2781_v2 }
 0x426   : > { %2794 = vpow2.f32 %v1341_v31  ;;  %v2866_v31 = vld [vmem:[%s3203_s26 + $0x30] sm:$0xff] }
 0x427   : > { %v2785_v24 = vpop.eup %2784  ;;  %1670 = vmatmul.mubr.f32.gmra.mrb[60].mxu0 %v4013_v39 }
 0x428   : > { %v2787_v28 = vpop.eup %2786  ;;  %1674 = vmatprep.mubr.f32.mxu0 %v4098_v17  ;;  %1407 = vadd.xlane.f32.xlu0 %v1406_v50 }
 0x429   : > { %v1424_v49 = vadd.f32 %v2787_v28, %v2785_v24 }
 0x42b   : > { %v2789_v58 = vpop.eup %2788  ;;  %1675 = vmatmul.mubr.f32.gmra.mrb[62].mxu0 %v4095_v56 }
 0x42c   : > { %v2791_v43 = vpop.eup %2790  ;;  %1679 = vmatprep.mubr.f32.mxu0 %v4023_v55  ;;  %1413 = vadd.xlane.f32.xlu0 %v1412_v35  ;;  %v1348_v55 = vpop.xlane.xlu0 %1347 }
 0x42d   : > { %1749 = vmatprep.mubr.f32.mxu1 %v2791_v43  ;;  %v1433_v37 = vadd.f32 %v2791_v43, %v2789_v58 }
 0x42e   : > { %1750 = vmatmul.mubr.f32.vlgmr.msra.gmra.mrb[64].mxu1 %v2789_v58 }
 0x42f   : > { %v2793_v41 = vpop.eup %2792  ;;  %1680 = vmatmul.mubr.f32.gmra.mrb[64].mxu0 %v4021_v4  ;;  %1434 = vadd.xlane.f32.xlu1 %v1433_v37  ;;  %v1345_v4 = vpop.xlane.xlu1 %1344 }
 0x430   : > { %v2795_v39 = vpop.eup %2794  ;;  %1684 = vmatprep.mubr.f32.mxu0 %v4109_v16  ;;  %1419 = vadd.xlane.f32.xlu0 %v1418_v11  ;;  %2796 = vrcp.f32 %v1345_v4 }
 0x431   : > { %1754 = vmatprep.mubr.f32.mxu1 %v2795_v39  ;;  %v1436_v17 = vadd.f32 %v2795_v39, %v2793_v41  ;;  %2798 = vrcp.f32 %v1348_v55 }
 0x432   : > { %1755 = vmatmul.mubr.f32.gmra.mrb[66].mxu1 %v2793_v41 }
 0x433   : > { %1685 = vmatmul.mubr.f32.gmra.mrb[66].mxu0 %v4106_v63 }
 0x434   : > { %1689 = vmatprep.mubr.f32.mxu0 %v4031_v1  ;;  %1425 = vadd.xlane.f32.xlu0 %v1424_v49  ;;  %v1354_v1 = vpop.xlane.xlu0 %1353 }
 0x437   : > { %1690 = vmatmul.mubr.f32.gmra.mrb[68].mxu0 %v4029_v33  ;;  %v1351_v33 = vpop.xlane.xlu1 %1350 }
 0x438   : > { %1694 = vmatprep.mubr.f32.mxu0 %v4120_v53  ;;  %1431 = vadd.xlane.f32.xlu0 %v4090_v21  ;;  %2800 = vrcp.f32 %v1351_v33  ;;  %v2861_v21 = vld [vmem:[%s3203_s26 + $0x8] sm:$0xff] }
 0x439   : > { %2802 = vrcp.f32 %v1354_v1 }
 0x43b   : > { %1695 = vmatmul.mubr.f32.gmra.mrb[70].mxu0 %v4117_v9 }
 0x43c   : > { %1699 = vmatprep.mubr.f32.mxu0 %v4039_v47  ;;  %1437 = vadd.xlane.f32.xlu0 %v1436_v17 }
 0x43f   : > { %1700 = vmatmul.mubr.f32.gmra.mrb[72].mxu0 %v4037_v46  ;;  %v2797_v46 = vpop.eup %2796 }
 0x440   : > { %1704 = vmatprep.mubr.f32.mxu0 %v4130_v34 }
 0x443   : > { %1705 = vmatmul.mubr.f32.gmra.mrb[74].mxu0 %v4127_v20 }
 0x444   : > { %1709 = vmatprep.mubr.f32.mxu0 %v4049_v38 }
 0x447   : > { %1710 = vmatmul.mubr.f32.gmra.mrb[76].mxu0 %v4047_v13 }
 0x448   : > { %1714 = vmatprep.mubr.f32.mxu0 %v2779_v44  ;;  %v2865_v44 = vld [vmem:[%s3203_s26 + $0x28] sm:$0xff] }
 0x44b   : > { %1715 = vmatmul.mubr.f32.gmra.mrb[78].mxu0 %v2777_v19 }
 0x44c   : > { %1719 = vmatprep.mubr.f32.mxu0 %v4059_v29  ;;  %v2860_v29 = vld [vmem:[%s3203_s26] sm:$0xff] }
 0x44f   : > { %1720 = vmatmul.mubr.f32.gmra.mrb[80].mxu0 %v4057_v18 }
 0x450   : > { %1724 = vmatprep.mubr.f32.mxu0 %v2783_v52 }
 0x453   : > { %1725 = vmatmul.mubr.f32.gmra.mrb[82].mxu0 %v2781_v2 }
 0x454   : > { %1729 = vmatprep.mubr.f32.mxu0 %v4067_v48  ;;  %v2799_v48 = vpop.eup %2798 }
 0x455   : > { %v2801_v63 = vpop.eup %2800 }
 0x456   : > { %v2803_v7 = vpop.eup %2802 }
 0x457   : > { %1730 = vmatmul.mubr.f32.gmra.mrb[84].mxu0 %v4065_v26 }
 0x458   : > { %1734 = vmatprep.mubr.f32.mxu0 %v2787_v28 }
 0x45b   : > { %1735 = vmatmul.mubr.f32.gmra.mrb[86].mxu0 %v2785_v24 }
 0x45c   : > { %1739 = vmatprep.mubr.f32.mxu0 %v4075_v36 }
 0x45f   : > { %1740 = vmatmul.mubr.f32.gmra.mrb[88].mxu0 %v4073_v59  ;;  %v1357_v18 = vpop.xlane.xlu1 %1356 }
 0x460   : > { %1744 = vmatprep.mubr.f32.mxu0 %v4083_v32  ;;  %2804 = vrcp.f32 %v1357_v18 }
 0x463   : > { %1745 = vmatmul.mubr.f32.gmra.mrb[90].mxu0 %v4081_v12  ;;  %v1360_v32 = vpop.xlane.xlu0 %1359 }
 0x464   : > { %2806 = vrcp.f32 %v1360_v32 }
 0x465   : > { %v1363_v8 = vpop.xlane.xlu1 %1362 }
 0x466   : > { %2808 = vrcp.f32 %v1363_v8 }
 0x469   : > { %v1369_v30 = vpop.xlane.xlu1 %1368 }
 0x46a   : > { %v2805_v42 = vpop.eup %2804 }
 0x46e   : > { %v2807_v25 = vpop.eup %2806 }
 0x46f   : > { %v1375_v2 = vpop.xlane.xlu1 %1374 }
 0x470   : > { %v2809_v45 = vpop.eup %2808 }
 0x477   : > { %v1381_v11 = vpop.xlane.xlu1 %1380 }
 0x47b   : > { %v1387_v28 = vpop.xlane.xlu1 %1386 }
 0x47f   : > { %v4193_v58 = vpop.xlane.xlu1 %1392 }
 0x483   : > { %v4197_v37 = vpop.xlane.xlu1 %1398 }
 0x487   : > { %v4201_v39 = vpop.xlane.xlu1 %1404 }
 0x48b   : > { %v4205_v55 = vpop.xlane.xlu1 %1410 }
 0x499   : > { %v1366_v0 = vpop.xlane.xlu0 %1365 }
 0x49a   : > { %2810 = vrcp.f32 %v1366_v0 }
 0x49b   : > { %2812 = vrcp.f32 %v1369_v30  ;;  %v2872_v30 = vld [vmem:[%s3203_s26 + $0x60] sm:$0xff] }
 0x49d   : > { %v1372_v54 = vpop.xlane.xlu0 %1371 }
 0x49e   : > { %2814 = vrcp.f32 %v1372_v54 }
 0x49f   : > { %2816 = vrcp.f32 %v1375_v2  ;;  %v2873_v2 = vld [vmem:[%s3203_s26 + $0x68] sm:$0xff] }
 0x4a1   : > { %v1378_v5 = vpop.xlane.xlu0 %1377 }
 0x4a2   : > { %v1601_v47 = vpop.f32.mrb[32].mxu0  ;;  %2818 = vrcp.f32 %v1378_v5 }
 0x4a3   : > { %v1792_v13 = vmul.f32 %v2797_v46, %v1601_v47  ;;  %v1603_v38 = vpop.f32.mrb[33].mxu0  ;;  %2820 = vrcp.f32 %v1381_v11 }
 0x4a4   : > { %v2811_v4 = vpop.eup %2810 }
 0x4a5   : > { %v1824_v26 = vadd.f32 %v2860_v29, %v1792_v13  ;;  %v1384_v24 = vpop.xlane.xlu0 %1383  ;;  %v2867_v13 = vld [vmem:[%s3203_s26 + $0x38] sm:$0xff]  ;;  %v2813_v18 = vpop.eup %2812 }
 0x4a6   : > { %v1606_v59 = vpop.f32.mrb[34].mxu0  ;;  %2822 = vrcp.f32 %v1384_v24 }
 0x4a7   : > { %1856 = vst.msk [vmem:[%s4171_s4] sm:$0xff] %vm251_vm0, %v1824_v26  ;;  %v1793_v36 = vmul.f32 %v2799_v48, %v1606_v59  ;;  %v1608_v12 = vpop.f32.mrb[35].mxu0  ;;  %v4212_v59 = vpop.xlane.xlu1 %1416  ;;  %2824 = vrcp.f32 %v1387_v28  ;;  %v2874_v28 = vld [vmem:[%s3203_s26 + $0x70] sm:$0xff] }
 0x4a8   : > { %v2815_v32 = vpop.eup %2814 }
 0x4a9   : > { %v1825_v56 = vadd.f32 %v2861_v21, %v1793_v36  ;;  %v1390_v49 = vpop.xlane.xlu0 %1389  ;;  %v2868_v36 = vld [vmem:[%s3203_s26 + $0x40] sm:$0xff]  ;;  %v2817_v8 = vpop.eup %2816 }
 0x4aa   : > { %v1611_v16 = vpop.f32.mrb[36].mxu0  ;;  %2826 = vrcp.f32 %v1390_v49 }
 0x4ab   : > { %1857 = vst.msk [vmem:[%s4171_s4 + $0x8] sm:$0xff] %vm251_vm0, %v1825_v56  ;;  %v1794_v10 = vmul.f32 %v2801_v63, %v1611_v16  ;;  %v1613_v9 = vpop.f32.mrb[37].mxu0 }
 0x4ad   : > { %v1826_v53 = vadd.f32 %v2862_v61, %v1794_v10  ;;  %v4195_v43 = vpop.xlane.xlu0 %1395  ;;  %v2869_v10 = vld [vmem:[%s3203_s26 + $0x48] sm:$0xff]  ;;  %v4220_v61 = vpop.xlane.xlu1 %1422 }
 0x4ae   : > { %v1616_v22 = vpop.f32.mrb[38].mxu0 }
 0x4af   : > { %1858 = vst.msk [vmem:[%s4171_s4 + $0x10] sm:$0xff] %vm251_vm0, %v1826_v53  ;;  %v1795_v60 = vmul.f32 %v2803_v7, %v1616_v22  ;;  %v1618_v15 = vpop.f32.mrb[39].mxu0 }
 0x4b0   : > { %v2870_v15 = vld [vmem:[%s3203_s26 + $0x50] sm:$0xff] }
 0x4b1   : > { %v1827_v20 = vadd.f32 %v2863_v62, %v1795_v60  ;;  %v4199_v41 = vpop.xlane.xlu0 %1401  ;;  %v2819_v62 = vpop.eup %2818 }
 0x4b2   : > { %v1621_v23 = vpop.f32.mrb[40].mxu0 }
 0x4b3   : > { %1859 = vst.msk [vmem:[%s4171_s4 + $0x18] sm:$0xff] %vm251_vm0, %v1827_v20  ;;  %v1796_v34 = vmul.f32 %v2805_v42, %v1621_v23  ;;  %v1623_v51 = vpop.f32.mrb[41].mxu0 }
 0x4b4   : > { %v2871_v51 = vld [vmem:[%s3203_s26 + $0x58] sm:$0xff] }
 0x4b5   : > { %v1828_v6 = vadd.f32 %v2864_v40, %v1796_v34  ;;  %v4203_v17 = vpop.xlane.xlu0 %1407  ;;  %v4229_v34 = vpop.xlane.xlu1 %1428 }
 0x4b6   : > { %v1626_v50 = vpop.f32.mrb[42].mxu0 }
 0x4b7   : > { %1860 = vst.msk [vmem:[%s4171_s4 + $0x20] sm:$0xff] %vm251_vm0, %v1828_v6  ;;  %v1797_v19 = vmul.f32 %v2807_v25, %v1626_v50  ;;  %v1628_v27 = vpop.f32.mrb[43].mxu0  ;;  %v2821_v6 = vpop.eup %2820 }
 0x4b9   : > { %v1829_v57 = vadd.f32 %v2865_v44, %v1797_v19  ;;  %v4207_v47 = vpop.xlane.xlu0 %1413 }
 0x4ba   : > { %v1631_v3 = vpop.f32.mrb[44].mxu0 }
 0x4bb   : > { %1861 = vst.msk [vmem:[%s4171_s4 + $0x28] sm:$0xff] %vm251_vm0, %v1829_v57  ;;  %v1798_v14 = vmul.f32 %v2809_v45, %v1631_v3  ;;  %v1633_v35 = vpop.f32.mrb[45].mxu0  ;;  %v2823_v57 = vpop.eup %2822 }
 0x4bc   : > { %v1435_v27 = vpop.xlane.xlu1 %1434 }
 0x4bd   : > { %v1830_v52 = vadd.f32 %v2866_v31, %v1798_v14  ;;  %v4215_v21 = vpop.xlane.xlu0 %1419  ;;  %2828 = vrcp.f32 %v1435_v27  ;;  %v2825_v31 = vpop.eup %2824 }
 0x4be   : > { %2830 = vrcp.f32 %v4193_v58 }
 0x4bf   : > { %1862 = vst.msk [vmem:[%s4171_s4 + $0x30] sm:$0xff] %vm251_vm0, %v1830_v52 }
 0x4c1   : > { %v4224_v60 = vpop.xlane.xlu0 %1425 }
 0x4c5   : > { %v4232_v25 = vpop.xlane.xlu0 %1431 }
 0x4c9   : > { %v1438_v35 = vpop.xlane.xlu0 %1437 }
 0x4ca   : > { %2832 = vrcp.f32 %v1438_v35 }
 0x4cb   : > { %2834 = vrcp.f32 %v4195_v43 }
 0x4cc   : > { %2836 = vrcp.f32 %v4197_v37 }
 0x4cd   : > { %2838 = vrcp.f32 %v4199_v41 }
 0x4ce   : > { %2840 = vrcp.f32 %v4201_v39 }
 0x4cf   : > { %2842 = vrcp.f32 %v4203_v17 }
 0x4d0   : > { %2844 = vrcp.f32 %v4205_v55 }
 0x4d1   : > { %2846 = vrcp.f32 %v4207_v47 }
 0x4d2   : > { %2848 = vrcp.f32 %v4212_v59 }
 0x4d3   : > { %2850 = vrcp.f32 %v4215_v21 }
 0x4d4   : > { %2852 = vrcp.f32 %v4220_v61 }
 0x4d5   : > { %2854 = vrcp.f32 %v4224_v60 }
 0x4d6   : > { %2856 = vrcp.f32 %v4229_v34 }
 0x4de   : > { %v1636_v33 = vpop.f32.mrb[46].mxu0 }
 0x4df   : > { %v1799_v1 = vmul.f32 %v2811_v4, %v1636_v33  ;;  %v1638_v46 = vpop.f32.mrb[47].mxu0  ;;  %v2827_v4 = vpop.eup %2826  ;;  %2858 = vrcp.f32 %v4232_v25 }
 0x4e0   : > { %v2829_v46 = vpop.eup %2828 }
 0x4e1   : > { %v1831_v38 = vadd.f32 %v2867_v13, %v1799_v1  ;;  %v2875_v13 = vld [vmem:[%s3203_s26 + $0x78] sm:$0xff] }
 0x4e2   : > { %v1641_v29 = vpop.f32.mrb[48].mxu0 }
 0x4e3   : > { %1863 = vst.msk [vmem:[%s4171_s4 + $0x38] sm:$0xff] %vm251_vm0, %v1831_v38  ;;  %v1800_v26 = vmul.f32 %v2813_v18, %v1641_v29  ;;  %v1643_v48 = vpop.f32.mrb[49].mxu0  ;;  %v2831_v29 = vpop.eup %2830 }
 0x4e5   : > { %v1832_v12 = vadd.f32 %v2868_v36, %v1800_v26 }
 0x4e6   : > { %v1646_v56 = vpop.f32.mrb[50].mxu0 }
 0x4e7   : > { %1864 = vst.msk [vmem:[%s4171_s4 + $0x40] sm:$0xff] %vm251_vm0, %v1832_v12  ;;  %v1801_v63 = vmul.f32 %v2815_v32, %v1646_v56  ;;  %v1648_v16 = vpop.f32.mrb[51].mxu0  ;;  %v2876_v32 = vld [vmem:[%s3203_s26 + $0xf0] sm:$0xff]  ;;  %v2833_v56 = vpop.eup %2832 }
 0x4e9   : > { %v1833_v9 = vadd.f32 %v2869_v10, %v1801_v63  ;;  %v2877_v63 = vld [vmem:[%s3203_s26 + $0x80] sm:$0xff] }
 0x4ea   : > { %v1651_v53 = vpop.f32.mrb[52].mxu0 }
 0x4eb   : > { %1865 = vst.msk [vmem:[%s4171_s4 + $0x48] sm:$0xff] %vm251_vm0, %v1833_v9  ;;  %v1802_v7 = vmul.f32 %v2817_v8, %v1651_v53  ;;  %v1653_v22 = vpop.f32.mrb[53].mxu0  ;;  %v2835_v9 = vpop.eup %2834 }
 0x4ed   : > { %v1834_v0 = vadd.f32 %v2870_v15, %v1802_v7  ;;  %v2878_v15 = vld [vmem:[%s3203_s26 + $0xf8] sm:$0xff] }
 0x4ee   : > { %v1656_v20 = vpop.f32.mrb[54].mxu0 }
 0x4ef   : > { %1866 = vst.msk [vmem:[%s4171_s4 + $0x50] sm:$0xff] %vm251_vm0, %v1834_v0  ;;  %v1803_v42 = vmul.f32 %v2819_v62, %v1656_v20  ;;  %v1658_v23 = vpop.f32.mrb[55].mxu0  ;;  %v2879_v62 = vld [vmem:[%s3203_s26 + $0x88] sm:$0xff] }
 0x4f1   : > { %v1835_v40 = vadd.f32 %v2871_v51, %v1803_v42  ;;  %v2837_v42 = vpop.eup %2836 }
 0x4f2   : > { %v1661_v54 = vpop.f32.mrb[56].mxu0 }
 0x4f3   : > { %1867 = vst.msk [vmem:[%s4171_s4 + $0x58] sm:$0xff] %vm251_vm0, %v1835_v40  ;;  %v1804_v50 = vmul.f32 %v2821_v6, %v1661_v54  ;;  %v1663_v19 = vpop.f32.mrb[57].mxu0  ;;  %v2880_v6 = vld [vmem:[%s3203_s26 + $0x90] sm:$0xff]  ;;  %v2839_v54 = vpop.eup %2838 }
 0x4f5   : > { %v1836_v44 = vadd.f32 %v2872_v30, %v1804_v50  ;;  %v2881_v30 = vld [vmem:[%s3203_s26 + $0x98] sm:$0xff] }
 0x4f6   : > { %v1666_v45 = vpop.f32.mrb[58].mxu0 }
 0x4f7   : > { %1868 = vst.msk [vmem:[%s4171_s4 + $0x60] sm:$0xff] %vm251_vm0, %v1836_v44  ;;  %v1805_v3 = vmul.f32 %v2823_v57, %v1666_v45  ;;  %v1668_v14 = vpop.f32.mrb[59].mxu0  ;;  %v2841_v57 = vpop.eup %2840 }
 0x4f8   : > { %v2882_v14 = vld [vmem:[%s3203_s26 + $0xa0] sm:$0xff] }
 0x4f9   : > { %v1837_v5 = vadd.f32 %v2873_v2, %v1805_v3  ;;  %v2843_v2 = vpop.eup %2842 }
 0x4fa   : > { %v1671_v52 = vpop.f32.mrb[60].mxu0 }
 0x4fb   : > { %1869 = vst.msk [vmem:[%s4171_s4 + $0x68] sm:$0xff] %vm251_vm0, %v1837_v5  ;;  %v1806_v11 = vmul.f32 %v2825_v31, %v1671_v52  ;;  %v1673_v24 = vpop.f32.mrb[61].mxu0  ;;  %v2883_v52 = vld [vmem:[%s3203_s26 + $0xa8] sm:$0xff] }
 0x4fc   : > { %v2845_v24 = vpop.eup %2844 }
 0x4fd   : > { %v1838_v49 = vadd.f32 %v2874_v28, %v1806_v11 }
 0x4fe   : > { %v1676_v33 = vpop.f32.mrb[62].mxu0 }
 0x4ff   : > { %1870 = vst.msk [vmem:[%s4171_s4 + $0x70] sm:$0xff] %vm251_vm0, %v1838_v49  ;;  %v1807_v58 = vmul.f32 %v2827_v4, %v1676_v33  ;;  %v1678_v1 = vpop.f32.mrb[63].mxu0  ;;  %v2884_v4 = vld [vmem:[%s3203_s26 + $0xb0] sm:$0xff] }
 0x501   : > { %v1839_v38 = vadd.f32 %v2875_v13, %v1807_v58  ;;  %v1751_v18 = vpop.f32.mrb[64].mxu1  ;;  %v2847_v58 = vpop.eup %2846  ;;  %v2885_v13 = vld [vmem:[%s3203_s26 + $0xb8] sm:$0xff] }
 0x502   : > { %v1681_v43 = vpop.f32.mrb[64].mxu0  ;;  %v1822_v26 = vmul.f32 %v2829_v46, %v1751_v18  ;;  %v1753_v48 = vpop.f32.mrb[65].mxu1 }
 0x503   : > { %1871 = vst.msk [vmem:[%s4171_s4 + $0x78] sm:$0xff] %vm251_vm0, %v1839_v38  ;;  %v1808_v36 = vmul.f32 %v2831_v29, %v1681_v43  ;;  %v1683_v12 = vpop.f32.mrb[65].mxu0  ;;  %v2849_v18 = vpop.eup %2848 }
 0x504   : > { %v1854_v37 = vadd.f32 %v2876_v32, %v1822_v26  ;;  %v2886_v26 = vld [vmem:[%s3203_s26 + $0xc0] sm:$0xff] }
 0x505   : > { %v1840_v16 = vadd.f32 %v2877_v63, %v1808_v36  ;;  %v1756_v10 = vpop.f32.mrb[66].mxu1  ;;  %v2851_v36 = vpop.eup %2850 }
 0x506   : > { %1886 = vst.msk [vmem:[%s4171_s4 + $0xf0] sm:$0xff] %vm251_vm0, %v1854_v37  ;;  %v1686_v8 = vpop.f32.mrb[66].mxu0  ;;  %v1823_v53 = vmul.f32 %v2833_v56, %v1756_v10  ;;  %v1758_v7 = vpop.f32.mrb[67].mxu1  ;;  %v2887_v37 = vld [vmem:[%s3203_s26 + $0xc8] sm:$0xff] }
 0x507   : > { %1872 = vst.msk [vmem:[%s4171_s4 + $0x80] sm:$0xff] %vm251_vm0, %v1840_v16  ;;  %v1809_v41 = vmul.f32 %v2835_v9, %v1686_v8  ;;  %v1688_v22 = vpop.f32.mrb[67].mxu0  ;;  %v2853_v63 = vpop.eup %2852  ;;  %v2888_v9 = vld [vmem:[%s3203_s26 + $0xd0] sm:$0xff] }
 0x508   : > { %v1855_v0 = vadd.f32 %v2878_v15, %v1823_v53  ;;  %v2855_v53 = vpop.eup %2854  ;;  %v2889_v22 = vld [vmem:[%s3203_s26 + $0xd8] sm:$0xff] }
 0x509   : > { %v1841_v20 = vadd.f32 %v2879_v62, %v1809_v41 }
 0x50a   : > { %1887 = vst.msk [vmem:[%s4171_s4 + $0xf8] sm:$0xff] %vm251_vm0, %v1855_v0  ;;  %v1691_v23 = vpop.f32.mrb[68].mxu0  ;;  %v2857_v0 = vpop.eup %2856 }
 0x50b   : > { %1873 = vst.msk [vmem:[%s4171_s4 + $0x88] sm:$0xff] %vm251_vm0, %v1841_v20  ;;  %v1810_v51 = vmul.f32 %v2837_v42, %v1691_v23  ;;  %v1693_v40 = vpop.f32.mrb[69].mxu0  ;;  %v2890_v42 = vld [vmem:[%s3203_s26 + $0xe0] sm:$0xff] }
 0x50d   : > { %v1842_v39 = vadd.f32 %v2880_v6, %v1810_v51  ;;  %v2859_v51 = vpop.eup %2858 }
 0x50e   : > { %v1696_v50 = vpop.f32.mrb[70].mxu0 }
 0x50f   : > { %1874 = vst.msk [vmem:[%s4171_s4 + $0x90] sm:$0xff] %vm251_vm0, %v1842_v39  ;;  %v1811_v19 = vmul.f32 %v2839_v54, %v1696_v50  ;;  %v1698_v27 = vpop.f32.mrb[71].mxu0  ;;  %v2891_v54 = vld [vmem:[%s3203_s26 + $0xe8] sm:$0xff] }
 0x511   : > { %v1843_v44 = vadd.f32 %v2881_v30, %v1811_v19 }
 0x512   : > { %v1701_v45 = vpop.f32.mrb[72].mxu0 }
 0x513   : > { %1875 = vst.msk [vmem:[%s4171_s4 + $0x98] sm:$0xff] %vm251_vm0, %v1843_v44  ;;  %v1812_v17 = vmul.f32 %v2841_v57, %v1701_v45  ;;  %v1703_v3 = vpop.f32.mrb[73].mxu0 }
 0x515   : > { %v1844_v35 = vadd.f32 %v2882_v14, %v1812_v17 }
 0x516   : > { %v1706_v5 = vpop.f32.mrb[74].mxu0 }
 0x517   : > { %1876 = vst.msk [vmem:[%s4171_s4 + $0xa0] sm:$0xff] %vm251_vm0, %v1844_v35  ;;  %v1813_v55 = vmul.f32 %v2843_v2, %v1706_v5  ;;  %v1708_v31 = vpop.f32.mrb[75].mxu0 }
 0x519   : > { %v1845_v11 = vadd.f32 %v2883_v52, %v1813_v55 }
 0x51a   : > { %v1711_v28 = vpop.f32.mrb[76].mxu0 }
 0x51b   : > { %1877 = vst.msk [vmem:[%s4171_s4 + $0xa8] sm:$0xff] %vm251_vm0, %v1845_v11  ;;  %v1814_v47 = vmul.f32 %v2845_v24, %v1711_v28  ;;  %v1713_v49 = vpop.f32.mrb[77].mxu0 }
 0x51d   : > { %v1846_v33 = vadd.f32 %v2884_v4, %v1814_v47 }
 0x51e   : > { %v1716_v1 = vpop.f32.mrb[78].mxu0 }
 0x51f   : > { %1878 = vst.msk [vmem:[%s4171_s4 + $0xb0] sm:$0xff] %vm251_vm0, %v1846_v33  ;;  %v1815_v59 = vmul.f32 %v2847_v58, %v1716_v1  ;;  %v1718_v46 = vpop.f32.mrb[79].mxu0 }
 0x521   : > { %v1847_v38 = vadd.f32 %v2885_v13, %v1815_v59 }
 0x522   : > { %v1721_v29 = vpop.f32.mrb[80].mxu0 }
 0x523   : > { %1879 = vst.msk [vmem:[%s4171_s4 + $0xb8] sm:$0xff] %vm251_vm0, %v1847_v38  ;;  %v1816_v21 = vmul.f32 %v2849_v18, %v1721_v29  ;;  %v1723_v43 = vpop.f32.mrb[81].mxu0 }
 0x525   : > { %v1848_v48 = vadd.f32 %v2886_v26, %v1816_v21 }
 0x526   : > { %v1726_v12 = vpop.f32.mrb[82].mxu0 }
 0x527   : > { %1880 = vst.msk [vmem:[%s4171_s4 + $0xc0] sm:$0xff] %vm251_vm0, %v1848_v48  ;;  %v1817_v61 = vmul.f32 %v2851_v36, %v1726_v12  ;;  %v1728_v32 = vpop.f32.mrb[83].mxu0 }
 0x529   : > { %v1849_v56 = vadd.f32 %v2887_v37, %v1817_v61 }
 0x52a   : > { %v1731_v16 = vpop.f32.mrb[84].mxu0 }
 0x52b   : > { %1881 = vst.msk [vmem:[%s4171_s4 + $0xc8] sm:$0xff] %vm251_vm0, %v1849_v56  ;;  %v1818_v60 = vmul.f32 %v2853_v63, %v1731_v16  ;;  %v1733_v10 = vpop.f32.mrb[85].mxu0 }
 0x52d   : > { %v1850_v8 = vadd.f32 %v2888_v9, %v1818_v60 }
 0x52e   : > { %v1736_v7 = vpop.f32.mrb[86].mxu0 }
 0x52f   : > { %1882 = vst.msk [vmem:[%s4171_s4 + $0xd0] sm:$0xff] %vm251_vm0, %v1850_v8  ;;  %v1819_v34 = vmul.f32 %v2855_v53, %v1736_v7  ;;  %v1738_v41 = vpop.f32.mrb[87].mxu0 }
 0x531   : > { %v1851_v15 = vadd.f32 %v2889_v22, %v1819_v34 }
 0x532   : > { %v1741_v62 = vpop.f32.mrb[88].mxu0 }
 0x533   : > { %1883 = vst.msk [vmem:[%s4171_s4 + $0xd8] sm:$0xff] %vm251_vm0, %v1851_v15  ;;  %v1820_v25 = vmul.f32 %v2857_v0, %v1741_v62  ;;  %v1743_v20 = vpop.f32.mrb[89].mxu0 }
 0x535   : > { %v1852_v23 = vadd.f32 %v2890_v42, %v1820_v25 }
 0x536   : > { %v1746_v40 = vpop.f32.mrb[90].mxu0 }
 0x537   : > { %1884 = vst.msk [vmem:[%s4171_s4 + $0xe0] sm:$0xff] %vm251_vm0, %v1852_v23  ;;  %v1821_v6 = vmul.f32 %v2859_v51, %v1746_v40  ;;  %v1748_v39 = vpop.f32.mrb[91].mxu0 }
 0x539   : > { %v1853_v50 = vadd.f32 %v2891_v54, %v1821_v6 }
 0x53b   : > { %1885 = vst.msk [vmem:[%s4171_s4 + $0xe8] sm:$0xff] %vm251_vm0, %v1853_v50 }
 0x53c   : > { %2963 = shalt.err (!%p2960_p7)
}
 0x53d   : > { %s2964_s7 = scalar_lea.hbm %s4312_s28, 4096  ;;  %s2968_s18 = scalar_lea.hbm %s4364_s3, 8192 }
 0x53e   : > { %p2965_p9 = scmp.ne.s32.totalorder %s4312_s28, %s2964_s7  ;;  %p2969_p5 = scmp.lt.u32.totalorder %s4312_s28, %s4364_s3 }
 0x53f   : > { %p2970_p11 = scmp.lt.u32.totalorder %s2968_s18, %s2964_s7  ;;  %p2972_p4 = scmp.lt.u32.totalorder %s2964_s7, %s4312_s28 }
 0x540   : > { %p2966_p1 = pnand %p2965_p9, %p3146_p12 }
 0x541   : > { %p2971_p2 = por %p2970_p11, %p2969_p5 }
 0x542   : > { %p2967_p0 = pneg %p2966_p1 }
 0x543   : > { %p2973_p6 = por %p2972_p4, %p2971_p2 }
 0x545   : > { %p2974_p8 = pnand %p2973_p6, %p2967_p0 }
 0x547   : > { %2977 = shalt.err (!%p2974_p8)
}
 0x548   : > { %s3030_s9 = smov 128   ;;  %s3031_s4 = smov 8  }
 0x549   : > { %2450 = dma.vmem_to_hbm [thread:$0]  (%p3146_p12), %s4314_s5, 4096, %s4312_s28, %s1889_s16, %s3030_s9, %s3030_s9, %s3031_s4  }
 0x54a PF: > { %s1917_s25 = sand.u32 1, %s3008_s12   ;;  %p4438_p10 = scmp.ne.s32.totalorder %s4388_s19, 0 }
 0x54b   : > { %p4439_p13 = scmp.ge.s32.totalorder %s3020_s15, 2  ;;  %s1918_s11 = scalar_lea.sflag [#allocation4], %s1917_s25 }
 0x54d   : > { %p2461_p3 = pnand %p4439_p13, %p4438_p10 }
 0x54f   : > { %3003 = dma.done.wait (!%p2461_p3), %s1918_s11, 4096  }
 0x550   : > { %3005 = vsyncadd (!%p2461_p3), %s1918_s11, 4294963200  ;;  %p17_p7 = scmp.ge.s32.totalorder %s3108_s24, 4   ;;  %s4440_s12 = smov %s3012_s13 }
 0x551   : > { %s4441_s13 = smov %s3016_s14  ;;  %s4442_s14 = smov %s3142_s17 }
 0x552   : > { %s4443_s15 = smov %s3108_s24  ;;  %19 = sbr.rel (!%p17_p7) target bundleno = 6 (0x6), region = 81 }
 0x559   :  { %1923 = vsyncpa [#allocation3], 1 }
 0x55a   :  { %1925 = vsyncpa [#allocation3 + $0x1], 1 }
 0x55b   :  { %1926 = vsyncpa [#allocation6], 1 }
 0x55c   :  { %1927 = vsyncpa [#allocation4], 1 }
 0x55d   :  { %1929 = vsyncpa [#allocation4 + $0x1], 1 }

</bundles_post_ra>
